<compile_context>
chip_gen: v7x
topology: tpu7x:2x2x1
jax: 0.10.0
libtpu: 0.0.40
codegen_flags: <defaults>
</compile_context>

<pallas_src>
import jax
import jax.numpy as jnp
from jax import lax
from jax.experimental import pallas as pl
from jax.experimental.pallas import tpu as pltpu


# ----------------------------------------------------------------------------
# Pallas kernels
# ----------------------------------------------------------------------------
def bigru_layer_kernel(x_ref, wih_ref, whh_ref, bcomb_ref, bhn_ref,
                       out_ref, xproj_ref):
    """One GRU layer, one direction per grid step (grid=(2,)).

    x_ref     : (T*B, D)   time-major input, flattened over (T, B)
    wih_ref   : (D, 3H)    input->hidden weights, gate order [r, z, n]
    whh_ref   : (H, 3H)    hidden->hidden weights, gate order [r, z, n]
    bcomb_ref : (1, 3H)    b_ih (+ b_hh for r,z gates only)
    bhn_ref   : (1, H)     b_hh for the n gate (kept separate: multiplied by r)
    out_ref   : (T, B, H)  per-timestep hidden states for this direction
    xproj_ref : (T*B, 3H)  VMEM scratch for the hoisted input projection
    """
    d = pl.program_id(0)                       # 0 = forward, 1 = backward
    T, B, H = out_ref.shape

    # Hoisted input projection for all timesteps: one big MXU call + bias.
    xproj_ref[...] = (
        jnp.dot(x_ref[...], wih_ref[...], preferred_element_type=jnp.float32)
        + bcomb_ref[...]
    )

    # Hoist weight / bias loads (and the bias broadcast) out of the recurrence.
    whh = whh_ref[...]                                    # (H, 3H)
    bhn = jnp.broadcast_to(bhn_ref[...], (B, H))          # (B, H)

    # Time-reversal bookkeeping hoisted out of the loop (scalar ops only).
    offset = jnp.where(d == 0, 0, T - 1)
    sign = jnp.where(d == 0, 1, -1)

    def body(t, h_prev):
        idx = offset + sign * t                            # in-kernel reversal
        start = pl.multiple_of(idx * B, B)
        xp = xproj_ref[pl.ds(start, B), :]                 # (B, 3H)
        hp = jnp.dot(h_prev, whh,
                     preferred_element_type=jnp.float32)   # (B, 3H), fused gates
        r = jax.nn.sigmoid(xp[:, :H] + hp[:, :H])
        z = jax.nn.sigmoid(xp[:, H:2 * H] + hp[:, H:2 * H])
        n = jnp.tanh(xp[:, 2 * H:] + r * (hp[:, 2 * H:] + bhn))
        h_new = (1.0 - z) * n + z * h_prev
        out_ref[idx] = h_new                               # single store per step
        return h_new                                       # h carried in vregs

    lax.fori_loop(0, T, body, jnp.zeros((B, H), jnp.float32), unroll=True)


def fc_kernel(x_ref, w_ref, b_ref, o_ref):
    """Linear head on the direction-stacked last hidden states.

    x_ref : (2, B, H)  [forward h_{T-1}, backward state at time index T-1]
    w_ref : (2, H, O)  fc weight split by direction (rows [:H] fwd, [H:] bwd)
    b_ref : (1, O)
    o_ref : (B, O)
    """
    o_ref[...] = (
        jnp.dot(x_ref[0], w_ref[0], preferred_element_type=jnp.float32)
        + jnp.dot(x_ref[1], w_ref[1], preferred_element_type=jnp.float32)
        + b_ref[...]
    )


# ----------------------------------------------------------------------------
# Wrappers
# ----------------------------------------------------------------------------
def _vmem_spec():
    return pl.BlockSpec(memory_space=pltpu.MemorySpace.VMEM)


def bigru_layer(x_tbd, w_ih, w_hh, b_comb, b_hh_n):
    """x_tbd: (T, B, D); weights stacked over direction on the leading axis.

    Returns (2, T, B, H): [forward outputs, backward outputs (in time order)].
    """
    T, B, D = x_tbd.shape
    H = w_hh.shape[1]
    x2d = x_tbd.reshape(T * B, D)              # free reshape done by XLA

    return pl.pallas_call(
        bigru_layer_kernel,
        out_shape=jax.ShapeDtypeStruct((2, T, B, H), jnp.float32),
        grid_spec=pltpu.PrefetchScalarGridSpec(
            num_scalar_prefetch=0,
            grid=(2,),                         # direction axis
            in_specs=[
                pl.BlockSpec((T * B, D), lambda d: (0, 0)),           # shared x
                pl.BlockSpec((None, D, 3 * H), lambda d: (d, 0, 0)),  # w_ih[d]
                pl.BlockSpec((None, H, 3 * H), lambda d: (d, 0, 0)),  # w_hh[d]
                pl.BlockSpec((None, 1, 3 * H), lambda d: (d, 0, 0)),  # b_comb[d]
                pl.BlockSpec((None, 1, H), lambda d: (d, 0, 0)),      # b_hh_n[d]
            ],
            out_specs=pl.BlockSpec((None, T, B, H), lambda d: (d, 0, 0, 0)),
            scratch_shapes=[pltpu.VMEM((T * B, 3 * H), jnp.float32)],
        ),
        compiler_params=pltpu.CompilerParams(
            dimension_semantics=("parallel",)),   # two TCs on v7x
    )(x2d, w_ih, w_hh, b_comb, b_hh_n)


def bgru_forward(x, params):
    """Equivalent of BGRUModel.forward. x: (B, T, input_dim), batch_first."""
    B = x.shape[0]
    layer_in = jnp.transpose(x, (1, 0, 2))                 # (T, B, D) time-major

    n_layers = len(params["gru"])
    out2 = None
    for li, p in enumerate(params["gru"]):
        out2 = bigru_layer(layer_in, p["w_ih"], p["w_hh"],
                           p["b_comb"], p["b_hh_n"])       # (2, T, B, H)
        if li + 1 < n_layers:
            # Intermediate layers need the full (T, B, 2H) sequence as input.
            layer_in = jnp.concatenate([out2[0], out2[1]], axis=-1)

    # FC head needs only output[:, -1, :]; skip the final-layer concat and feed
    # the two directional last states directly (fwd at t=T-1; bwd output at
    # time index T-1 is its first processed step, matching PyTorch).
    last2 = out2[:, -1]                                    # (2, B, H)
    H = last2.shape[-1]
    output_dim = params["fc_w"].shape[1]
    fc_w2 = params["fc_w"].reshape(2, H, output_dim)       # contiguous split

    return pl.pallas_call(
        fc_kernel,
        out_shape=jax.ShapeDtypeStruct((B, output_dim), jnp.float32),
        in_specs=[_vmem_spec()] * 3,
        out_specs=_vmem_spec(),
    )(last2, fc_w2, params["fc_b"])


# ----------------------------------------------------------------------------
# Deterministic parameter init (PyTorch-style U(-1/sqrt(H), 1/sqrt(H))),
# stored directly in the gate-stacked / direction-stacked kernel layout.
# ----------------------------------------------------------------------------
def init_params(key, input_dim, hidden_dim, num_layers, output_dim):
    params = {"gru": []}
    H = hidden_dim
    bound = 1.0 / float(H) ** 0.5

    def uni(k, shape, b):
        return jax.random.uniform(k, shape, jnp.float32, -b, b)

    for l in range(num_layers):
        d_in = input_dim if l == 0 else 2 * H
        key, k1, k2, k3, k4 = jax.random.split(key, 5)
        w_ih = uni(k1, (2, d_in, 3 * H), bound)      # dirs x (D, 3H), [r,z,n]
        w_hh = uni(k2, (2, H, 3 * H), bound)
        b_ih = uni(k3, (2, 1, 3 * H), bound)
        b_hh = uni(k4, (2, 1, 3 * H), bound)
        # Pre-combine biases for r,z gates; keep n-gate b_hh separate (r * ...).
        b_comb = jnp.concatenate(
            [b_ih[..., :2 * H] + b_hh[..., :2 * H], b_ih[..., 2 * H:]], axis=-1)
        b_hh_n = b_hh[..., 2 * H:]
        params["gru"].append(
            {"w_ih": w_ih, "w_hh": w_hh, "b_comb": b_comb, "b_hh_n": b_hh_n})

    key, k1, k2 = jax.random.split(key, 3)
    k_fc = 1.0 / float(2 * H) ** 0.5
    params["fc_w"] = uni(k1, (2 * H, output_dim), k_fc)    # (2H, O)
    params["fc_b"] = uni(k2, (1, output_dim), k_fc)
    return params


# ----------------------------------------------------------------------------
# Pure-JAX reference (same math, lax.scan) for a correctness check
# ----------------------------------------------------------------------------
def _gru_dir_ref(x_tbd, w_ih, w_hh, b_comb, b_hh_n, reverse):
    B = x_tbd.shape[1]
    H = w_hh.shape[0]
    xs = x_tbd[::-1] if reverse else x_tbd

    def step(h, x_t):
        xp = x_t @ w_ih + b_comb
        hp = h @ w_hh
        r = jax.nn.sigmoid(xp[:, :H] + hp[:, :H])
        z = jax.nn.sigmoid(xp[:, H:2 * H] + hp[:, H:2 * H])
        n = jnp.tanh(xp[:, 2 * H:] + r * (hp[:, 2 * H:] + b_hh_n))
        h_new = (1.0 - z) * n + z * h
        return h_new, h_new

    _, ys = lax.scan(step, jnp.zeros((B, H), jnp.float32), xs)
    return ys[::-1] if reverse else ys


def bgru_forward_ref(x, params):
    layer_in = jnp.transpose(x, (1, 0, 2))
    for p in params["gru"]:
        f = _gru_dir_ref(layer_in, p["w_ih"][0], p["w_hh"][0],
                         p["b_comb"][0], p["b_hh_n"][0], False)
        b = _gru_dir_ref(layer_in, p["w_ih"][1], p["w_hh"][1],
                         p["b_comb"][1], p["b_hh_n"][1], True)
        layer_in = jnp.concatenate([f, b], axis=-1)
    last = layer_in[-1]
    return last @ params["fc_w"] + params["fc_b"]


# ----------------------------------------------------------------------------
if __name__ == "__main__":
    B, T = 2, 8
    input_dim, hidden_dim, num_layers, output_dim = 16, 32, 2, 4

    key = jax.random.PRNGKey(0)
    key, xkey = jax.random.split(key)
    x = jax.random.normal(xkey, (B, T, input_dim), jnp.float32)

    params = init_params(key, input_dim, hidden_dim, num_layers, output_dim)

    fwd = jax.jit(bgru_forward)
    out = jax.block_until_ready(fwd(x, params))

    ref = bgru_forward_ref(x, params)
    assert out.shape == (B, output_dim)
    assert jnp.allclose(out, ref, atol=1e-4, rtol=1e-4), "mismatch vs JAX reference"

    print("KERNEL_OK")
</pallas_src>

<mosaic_0001>
module attributes {stable_mosaic.version = 11 : i64} {
  func.func @bigru_layer_kernel(%arg0: i32, %arg1: memref<16x16xf32, #tpu.memory_space<vmem>>, %arg2: memref<1x16x96xf32, #tpu.memory_space<vmem>>, %arg3: memref<1x32x96xf32, #tpu.memory_space<vmem>>, %arg4: memref<1x1x96xf32, #tpu.memory_space<vmem>>, %arg5: memref<1x1x32xf32, #tpu.memory_space<vmem>>, %arg6: memref<1x8x2x32xf32, #tpu.memory_space<vmem>>, %arg7: memref<16x96xf32, #tpu.memory_space<vmem>>) attributes {dimension_semantics = [#tpu.dimension_semantics<parallel>], iteration_bounds = array<i64: 2>, scalar_prefetch = 0 : i64, scratch_operands = 1 : i64, tpu.core_type = #tpu.core_type<tc>, window_params = [{pipeline_mode = #tpu.pipeline_mode<synchronous>, transform_indices = @transform_0, window_bounds = array<i64: 16, 16>}, {transform_indices = @transform_1, window_bounds = array<i64: 1, 16, 96>}, {transform_indices = @transform_2, window_bounds = array<i64: 1, 32, 96>}, {transform_indices = @transform_3, window_bounds = array<i64: 1, 1, 96>}, {transform_indices = @transform_4, window_bounds = array<i64: 1, 1, 32>}, {transform_indices = @transform_5, window_bounds = array<i64: 1, 8, 2, 32>}]} {
    %c0 = arith.constant 0 : index
    %c0_0 = arith.constant 0 : index
    %0 = vector.load %arg1[%c0, %c0_0] : memref<16x16xf32, #tpu.memory_space<vmem>>, vector<16x16xf32>
    %c0_1 = arith.constant 0 : index
    %c0_2 = arith.constant 0 : index
    %c0_3 = arith.constant 0 : index
    %1 = vector.load %arg2[%c0_1, %c0_2, %c0_3] : memref<1x16x96xf32, #tpu.memory_space<vmem>>, vector<1x16x96xf32>
    %2 = vector.shape_cast %1 : vector<1x16x96xf32> to vector<16x96xf32>
    %cst = arith.constant dense<0.000000e+00> : vector<16x96xf32>
    %3 = tpu.matmul %0, %2, %cst {dimension_numbers = #tpu.dot_dimension_numbers<[1], [0], [0], [1], [0, 0, 1, 1], [], []>} : vector<16x16xf32>, vector<16x96xf32>, vector<16x96xf32> -> vector<16x96xf32>
    %c0_4 = arith.constant 0 : index
    %c0_5 = arith.constant 0 : index
    %c0_6 = arith.constant 0 : index
    %4 = vector.load %arg4[%c0_4, %c0_5, %c0_6] : memref<1x1x96xf32, #tpu.memory_space<vmem>>, vector<1x1x96xf32>
    %5 = vector.shape_cast %4 : vector<1x1x96xf32> to vector<1x96xf32>
    %6 = vector.broadcast %5 : vector<1x96xf32> to vector<16x96xf32>
    %7 = arith.addf %3, %6 : vector<16x96xf32>
    %c0_7 = arith.constant 0 : index
    %c0_8 = arith.constant 0 : index
    %8 = vector.load %arg7[%c0_7, %c0_8] : memref<16x96xf32, #tpu.memory_space<vmem>>, vector<16x96xf32>
    tpu.vector_store %arg7[%c0_7, %c0_8], %7 {strides = array<i32>} : memref<16x96xf32, #tpu.memory_space<vmem>>, vector<16x96xf32>,
    %c0_9 = arith.constant 0 : index
    %c0_10 = arith.constant 0 : index
    %c0_11 = arith.constant 0 : index
    %9 = vector.load %arg3[%c0_9, %c0_10, %c0_11] : memref<1x32x96xf32, #tpu.memory_space<vmem>>, vector<1x32x96xf32>
    %10 = vector.shape_cast %9 : vector<1x32x96xf32> to vector<32x96xf32>
    %c0_12 = arith.constant 0 : index
    %c0_13 = arith.constant 0 : index
    %c0_14 = arith.constant 0 : index
    %11 = vector.load %arg5[%c0_12, %c0_13, %c0_14] : memref<1x1x32xf32, #tpu.memory_space<vmem>>, vector<1x1x32xf32>
    %12 = vector.shape_cast %11 : vector<1x1x32xf32> to vector<1x32xf32>
    %13 = vector.shape_cast %12 : vector<1x32xf32> to vector<1x32xf32>
    %14 = vector.broadcast %13 : vector<1x32xf32> to vector<2x32xf32>
    %c0_i32 = arith.constant 0 : i32
    %15 = arith.cmpi eq, %arg0, %c0_i32 : i32
    %c0_i32_15 = arith.constant 0 : i32
    %c7_i32 = arith.constant 7 : i32
    %16 = arith.select %15, %c0_i32_15, %c7_i32 : i32
    %c0_i32_16 = arith.constant 0 : i32
    %17 = arith.cmpi eq, %arg0, %c0_i32_16 : i32
    %c1_i32 = arith.constant 1 : i32
    %c-1_i32 = arith.constant -1 : i32
    %18 = arith.select %17, %c1_i32, %c-1_i32 : i32
    %cst_17 = arith.constant 0.000000e+00 : f32
    %19 = vector.broadcast %cst_17 : f32 to vector<2x32xf32>
    %c0_i32_18 = arith.constant 0 : i32
    %20 = arith.muli %18, %c0_i32_18 : i32
    %21 = arith.addi %16, %20 : i32
    %c2_i32 = arith.constant 2 : i32
    %22 = arith.muli %21, %c2_i32 : i32
    %23 = tpu.assume_multiple %22, 2 : i32
    %24 = arith.index_cast %23 : i32 to index
    %c0_19 = arith.constant 0 : index
    %25 = vector.load %arg7[%24, %c0_19] : memref<16x96xf32, #tpu.memory_space<vmem>>, vector<2x96xf32>
    %cst_20 = arith.constant dense<0.000000e+00> : vector<2x96xf32>
    %26 = tpu.matmul %19, %10, %cst_20 {dimension_numbers = #tpu.dot_dimension_numbers<[1], [0], [0], [1], [0, 0, 1, 1], [], []>} : vector<2x32xf32>, vector<32x96xf32>, vector<2x96xf32> -> vector<2x96xf32>
    %27 = vector.extract_strided_slice %25 {offsets = [0, 0], sizes = [2, 32], strides = [1, 1]} : vector<2x96xf32> to vector<2x32xf32>
    %28 = vector.extract_strided_slice %26 {offsets = [0, 0], sizes = [2, 32], strides = [1, 1]} : vector<2x96xf32> to vector<2x32xf32>
    %29 = arith.addf %27, %28 : vector<2x32xf32>
    %30 = arith.negf %29 : vector<2x32xf32>
    %31 = math.exp %30 : vector<2x32xf32>
    %cst_21 = arith.constant 1.000000e+00 : f32
    %32 = vector.broadcast %cst_21 : f32 to vector<2x32xf32>
    %33 = arith.addf %32, %31 : vector<2x32xf32>
    %34 = arith.divf %32, %33 : vector<2x32xf32>
    %35 = vector.extract_strided_slice %25 {offsets = [0, 32], sizes = [2, 32], strides = [1, 1]} : vector<2x96xf32> to vector<2x32xf32>
    %36 = vector.extract_strided_slice %26 {offsets = [0, 32], sizes = [2, 32], strides = [1, 1]} : vector<2x96xf32> to vector<2x32xf32>
    %37 = arith.addf %35, %36 : vector<2x32xf32>
    %38 = arith.negf %37 : vector<2x32xf32>
    %39 = math.exp %38 : vector<2x32xf32>
    %cst_22 = arith.constant 1.000000e+00 : f32
    %40 = vector.broadcast %cst_22 : f32 to vector<2x32xf32>
    %41 = arith.addf %40, %39 : vector<2x32xf32>
    %42 = arith.divf %40, %41 : vector<2x32xf32>
    %43 = vector.extract_strided_slice %25 {offsets = [0, 64], sizes = [2, 32], strides = [1, 1]} : vector<2x96xf32> to vector<2x32xf32>
    %44 = vector.extract_strided_slice %26 {offsets = [0, 64], sizes = [2, 32], strides = [1, 1]} : vector<2x96xf32> to vector<2x32xf32>
    %45 = arith.addf %44, %14 : vector<2x32xf32>
    %46 = arith.mulf %34, %45 : vector<2x32xf32>
    %47 = arith.addf %43, %46 : vector<2x32xf32>
    %48 = math.tanh %47 : vector<2x32xf32>
    %cst_23 = arith.constant 1.000000e+00 : f32
    %49 = vector.broadcast %cst_23 : f32 to vector<2x32xf32>
    %50 = arith.subf %49, %42 : vector<2x32xf32>
    %51 = arith.mulf %50, %48 : vector<2x32xf32>
    %52 = arith.mulf %42, %19 : vector<2x32xf32>
    %53 = arith.addf %51, %52 : vector<2x32xf32>
    %c0_24 = arith.constant 0 : index
    %54 = arith.index_cast %21 : i32 to index
    %c0_25 = arith.constant 0 : index
    %c0_26 = arith.constant 0 : index
    %55 = vector.load %arg6[%c0_24, %54, %c0_25, %c0_26] : memref<1x8x2x32xf32, #tpu.memory_space<vmem>>, vector<1x1x2x32xf32>
    %56 = vector.shape_cast %55 : vector<1x1x2x32xf32> to vector<2x32xf32>
    %57 = vector.shape_cast %53 : vector<2x32xf32> to vector<1x1x2x32xf32>
    tpu.vector_store %arg6[%c0_24, %54, %c0_25, %c0_26], %57 {strides = array<i32>} : memref<1x8x2x32xf32, #tpu.memory_space<vmem>>, vector<1x1x2x32xf32>,
    %c1_i32_27 = arith.constant 1 : i32
    %58 = arith.muli %18, %c1_i32_27 : i32
    %59 = arith.addi %16, %58 : i32
    %c2_i32_28 = arith.constant 2 : i32
    %60 = arith.muli %59, %c2_i32_28 : i32
    %61 = tpu.assume_multiple %60, 2 : i32
    %62 = arith.index_cast %61 : i32 to index
    %c0_29 = arith.constant 0 : index
    %63 = vector.load %arg7[%62, %c0_29] : memref<16x96xf32, #tpu.memory_space<vmem>>, vector<2x96xf32>
    %cst_30 = arith.constant dense<0.000000e+00> : vector<2x96xf32>
    %64 = tpu.matmul %53, %10, %cst_30 {dimension_numbers = #tpu.dot_dimension_numbers<[1], [0], [0], [1], [0, 0, 1, 1], [], []>} : vector<2x32xf32>, vector<32x96xf32>, vector<2x96xf32> -> vector<2x96xf32>
    %65 = vector.extract_strided_slice %63 {offsets = [0, 0], sizes = [2, 32], strides = [1, 1]} : vector<2x96xf32> to vector<2x32xf32>
    %66 = vector.extract_strided_slice %64 {offsets = [0, 0], sizes = [2, 32], strides = [1, 1]} : vector<2x96xf32> to vector<2x32xf32>
    %67 = arith.addf %65, %66 : vector<2x32xf32>
    %68 = arith.negf %67 : vector<2x32xf32>
    %69 = math.exp %68 : vector<2x32xf32>
    %cst_31 = arith.constant 1.000000e+00 : f32
    %70 = vector.broadcast %cst_31 : f32 to vector<2x32xf32>
    %71 = arith.addf %70, %69 : vector<2x32xf32>
    %72 = arith.divf %70, %71 : vector<2x32xf32>
    %73 = vector.extract_strided_slice %63 {offsets = [0, 32], sizes = [2, 32], strides = [1, 1]} : vector<2x96xf32> to vector<2x32xf32>
    %74 = vector.extract_strided_slice %64 {offsets = [0, 32], sizes = [2, 32], strides = [1, 1]} : vector<2x96xf32> to vector<2x32xf32>
    %75 = arith.addf %73, %74 : vector<2x32xf32>
    %76 = arith.negf %75 : vector<2x32xf32>
    %77 = math.exp %76 : vector<2x32xf32>
    %cst_32 = arith.constant 1.000000e+00 : f32
    %78 = vector.broadcast %cst_32 : f32 to vector<2x32xf32>
    %79 = arith.addf %78, %77 : vector<2x32xf32>
    %80 = arith.divf %78, %79 : vector<2x32xf32>
    %81 = vector.extract_strided_slice %63 {offsets = [0, 64], sizes = [2, 32], strides = [1, 1]} : vector<2x96xf32> to vector<2x32xf32>
    %82 = vector.extract_strided_slice %64 {offsets = [0, 64], sizes = [2, 32], strides = [1, 1]} : vector<2x96xf32> to vector<2x32xf32>
    %83 = arith.addf %82, %14 : vector<2x32xf32>
    %84 = arith.mulf %72, %83 : vector<2x32xf32>
    %85 = arith.addf %81, %84 : vector<2x32xf32>
    %86 = math.tanh %85 : vector<2x32xf32>
    %cst_33 = arith.constant 1.000000e+00 : f32
    %87 = vector.broadcast %cst_33 : f32 to vector<2x32xf32>
    %88 = arith.subf %87, %80 : vector<2x32xf32>
    %89 = arith.mulf %88, %86 : vector<2x32xf32>
    %90 = arith.mulf %80, %53 : vector<2x32xf32>
    %91 = arith.addf %89, %90 : vector<2x32xf32>
    %c0_34 = arith.constant 0 : index
    %92 = arith.index_cast %59 : i32 to index
    %c0_35 = arith.constant 0 : index
    %c0_36 = arith.constant 0 : index
    %93 = vector.load %arg6[%c0_34, %92, %c0_35, %c0_36] : memref<1x8x2x32xf32, #tpu.memory_space<vmem>>, vector<1x1x2x32xf32>
    %94 = vector.shape_cast %93 : vector<1x1x2x32xf32> to vector<2x32xf32>
    %95 = vector.shape_cast %91 : vector<2x32xf32> to vector<1x1x2x32xf32>
    tpu.vector_store %arg6[%c0_34, %92, %c0_35, %c0_36], %95 {strides = array<i32>} : memref<1x8x2x32xf32, #tpu.memory_space<vmem>>, vector<1x1x2x32xf32>,
    %c2_i32_37 = arith.constant 2 : i32
    %96 = arith.muli %18, %c2_i32_37 : i32
    %97 = arith.addi %16, %96 : i32
    %c2_i32_38 = arith.constant 2 : i32
    %98 = arith.muli %97, %c2_i32_38 : i32
    %99 = tpu.assume_multiple %98, 2 : i32
    %100 = arith.index_cast %99 : i32 to index
    %c0_39 = arith.constant 0 : index
    %101 = vector.load %arg7[%100, %c0_39] : memref<16x96xf32, #tpu.memory_space<vmem>>, vector<2x96xf32>
    %cst_40 = arith.constant dense<0.000000e+00> : vector<2x96xf32>
    %102 = tpu.matmul %91, %10, %cst_40 {dimension_numbers = #tpu.dot_dimension_numbers<[1], [0], [0], [1], [0, 0, 1, 1], [], []>} : vector<2x32xf32>, vector<32x96xf32>, vector<2x96xf32> -> vector<2x96xf32>
    %103 = vector.extract_strided_slice %101 {offsets = [0, 0], sizes = [2, 32], strides = [1, 1]} : vector<2x96xf32> to vector<2x32xf32>
    %104 = vector.extract_strided_slice %102 {offsets = [0, 0], sizes = [2, 32], strides = [1, 1]} : vector<2x96xf32> to vector<2x32xf32>
    %105 = arith.addf %103, %104 : vector<2x32xf32>
    %106 = arith.negf %105 : vector<2x32xf32>
    %107 = math.exp %106 : vector<2x32xf32>
    %cst_41 = arith.constant 1.000000e+00 : f32
    %108 = vector.broadcast %cst_41 : f32 to vector<2x32xf32>
    %109 = arith.addf %108, %107 : vector<2x32xf32>
    %110 = arith.divf %108, %109 : vector<2x32xf32>
    %111 = vector.extract_strided_slice %101 {offsets = [0, 32], sizes = [2, 32], strides = [1, 1]} : vector<2x96xf32> to vector<2x32xf32>
    %112 = vector.extract_strided_slice %102 {offsets = [0, 32], sizes = [2, 32], strides = [1, 1]} : vector<2x96xf32> to vector<2x32xf32>
    %113 = arith.addf %111, %112 : vector<2x32xf32>
    %114 = arith.negf %113 : vector<2x32xf32>
    %115 = math.exp %114 : vector<2x32xf32>
    %cst_42 = arith.constant 1.000000e+00 : f32
    %116 = vector.broadcast %cst_42 : f32 to vector<2x32xf32>
    %117 = arith.addf %116, %115 : vector<2x32xf32>
    %118 = arith.divf %116, %117 : vector<2x32xf32>
    %119 = vector.extract_strided_slice %101 {offsets = [0, 64], sizes = [2, 32], strides = [1, 1]} : vector<2x96xf32> to vector<2x32xf32>
    %120 = vector.extract_strided_slice %102 {offsets = [0, 64], sizes = [2, 32], strides = [1, 1]} : vector<2x96xf32> to vector<2x32xf32>
    %121 = arith.addf %120, %14 : vector<2x32xf32>
    %122 = arith.mulf %110, %121 : vector<2x32xf32>
    %123 = arith.addf %119, %122 : vector<2x32xf32>
    %124 = math.tanh %123 : vector<2x32xf32>
    %cst_43 = arith.constant 1.000000e+00 : f32
    %125 = vector.broadcast %cst_43 : f32 to vector<2x32xf32>
    %126 = arith.subf %125, %118 : vector<2x32xf32>
    %127 = arith.mulf %126, %124 : vector<2x32xf32>
    %128 = arith.mulf %118, %91 : vector<2x32xf32>
    %129 = arith.addf %127, %128 : vector<2x32xf32>
    %c0_44 = arith.constant 0 : index
    %130 = arith.index_cast %97 : i32 to index
    %c0_45 = arith.constant 0 : index
    %c0_46 = arith.constant 0 : index
    %131 = vector.load %arg6[%c0_44, %130, %c0_45, %c0_46] : memref<1x8x2x32xf32, #tpu.memory_space<vmem>>, vector<1x1x2x32xf32>
    %132 = vector.shape_cast %131 : vector<1x1x2x32xf32> to vector<2x32xf32>
    %133 = vector.shape_cast %129 : vector<2x32xf32> to vector<1x1x2x32xf32>
    tpu.vector_store %arg6[%c0_44, %130, %c0_45, %c0_46], %133 {strides = array<i32>} : memref<1x8x2x32xf32, #tpu.memory_space<vmem>>, vector<1x1x2x32xf32>,
    %c3_i32 = arith.constant 3 : i32
    %134 = arith.muli %18, %c3_i32 : i32
    %135 = arith.addi %16, %134 : i32
    %c2_i32_47 = arith.constant 2 : i32
    %136 = arith.muli %135, %c2_i32_47 : i32
    %137 = tpu.assume_multiple %136, 2 : i32
    %138 = arith.index_cast %137 : i32 to index
    %c0_48 = arith.constant 0 : index
    %139 = vector.load %arg7[%138, %c0_48] : memref<16x96xf32, #tpu.memory_space<vmem>>, vector<2x96xf32>
    %cst_49 = arith.constant dense<0.000000e+00> : vector<2x96xf32>
    %140 = tpu.matmul %129, %10, %cst_49 {dimension_numbers = #tpu.dot_dimension_numbers<[1], [0], [0], [1], [0, 0, 1, 1], [], []>} : vector<2x32xf32>, vector<32x96xf32>, vector<2x96xf32> -> vector<2x96xf32>
    %141 = vector.extract_strided_slice %139 {offsets = [0, 0], sizes = [2, 32], strides = [1, 1]} : vector<2x96xf32> to vector<2x32xf32>
    %142 = vector.extract_strided_slice %140 {offsets = [0, 0], sizes = [2, 32], strides = [1, 1]} : vector<2x96xf32> to vector<2x32xf32>
    %143 = arith.addf %141, %142 : vector<2x32xf32>
    %144 = arith.negf %143 : vector<2x32xf32>
    %145 = math.exp %144 : vector<2x32xf32>
    %cst_50 = arith.constant 1.000000e+00 : f32
    %146 = vector.broadcast %cst_50 : f32 to vector<2x32xf32>
    %147 = arith.addf %146, %145 : vector<2x32xf32>
    %148 = arith.divf %146, %147 : vector<2x32xf32>
    %149 = vector.extract_strided_slice %139 {offsets = [0, 32], sizes = [2, 32], strides = [1, 1]} : vector<2x96xf32> to vector<2x32xf32>
    %150 = vector.extract_strided_slice %140 {offsets = [0, 32], sizes = [2, 32], strides = [1, 1]} : vector<2x96xf32> to vector<2x32xf32>
    %151 = arith.addf %149, %150 : vector<2x32xf32>
    %152 = arith.negf %151 : vector<2x32xf32>
    %153 = math.exp %152 : vector<2x32xf32>
    %cst_51 = arith.constant 1.000000e+00 : f32
    %154 = vector.broadcast %cst_51 : f32 to vector<2x32xf32>
    %155 = arith.addf %154, %153 : vector<2x32xf32>
    %156 = arith.divf %154, %155 : vector<2x32xf32>
    %157 = vector.extract_strided_slice %139 {offsets = [0, 64], sizes = [2, 32], strides = [1, 1]} : vector<2x96xf32> to vector<2x32xf32>
    %158 = vector.extract_strided_slice %140 {offsets = [0, 64], sizes = [2, 32], strides = [1, 1]} : vector<2x96xf32> to vector<2x32xf32>
    %159 = arith.addf %158, %14 : vector<2x32xf32>
    %160 = arith.mulf %148, %159 : vector<2x32xf32>
    %161 = arith.addf %157, %160 : vector<2x32xf32>
    %162 = math.tanh %161 : vector<2x32xf32>
    %cst_52 = arith.constant 1.000000e+00 : f32
    %163 = vector.broadcast %cst_52 : f32 to vector<2x32xf32>
    %164 = arith.subf %163, %156 : vector<2x32xf32>
    %165 = arith.mulf %164, %162 : vector<2x32xf32>
    %166 = arith.mulf %156, %129 : vector<2x32xf32>
    %167 = arith.addf %165, %166 : vector<2x32xf32>
    %c0_53 = arith.constant 0 : index
    %168 = arith.index_cast %135 : i32 to index
    %c0_54 = arith.constant 0 : index
    %c0_55 = arith.constant 0 : index
    %169 = vector.load %arg6[%c0_53, %168, %c0_54, %c0_55] : memref<1x8x2x32xf32, #tpu.memory_space<vmem>>, vector<1x1x2x32xf32>
    %170 = vector.shape_cast %169 : vector<1x1x2x32xf32> to vector<2x32xf32>
    %171 = vector.shape_cast %167 : vector<2x32xf32> to vector<1x1x2x32xf32>
    tpu.vector_store %arg6[%c0_53, %168, %c0_54, %c0_55], %171 {strides = array<i32>} : memref<1x8x2x32xf32, #tpu.memory_space<vmem>>, vector<1x1x2x32xf32>,
    %c4_i32 = arith.constant 4 : i32
    %172 = arith.muli %18, %c4_i32 : i32
    %173 = arith.addi %16, %172 : i32
    %c2_i32_56 = arith.constant 2 : i32
    %174 = arith.muli %173, %c2_i32_56 : i32
    %175 = tpu.assume_multiple %174, 2 : i32
    %176 = arith.index_cast %175 : i32 to index
    %c0_57 = arith.constant 0 : index
    %177 = vector.load %arg7[%176, %c0_57] : memref<16x96xf32, #tpu.memory_space<vmem>>, vector<2x96xf32>
    %cst_58 = arith.constant dense<0.000000e+00> : vector<2x96xf32>
    %178 = tpu.matmul %167, %10, %cst_58 {dimension_numbers = #tpu.dot_dimension_numbers<[1], [0], [0], [1], [0, 0, 1, 1], [], []>} : vector<2x32xf32>, vector<32x96xf32>, vector<2x96xf32> -> vector<2x96xf32>
    %179 = vector.extract_strided_slice %177 {offsets = [0, 0], sizes = [2, 32], strides = [1, 1]} : vector<2x96xf32> to vector<2x32xf32>
    %180 = vector.extract_strided_slice %178 {offsets = [0, 0], sizes = [2, 32], strides = [1, 1]} : vector<2x96xf32> to vector<2x32xf32>
    %181 = arith.addf %179, %180 : vector<2x32xf32>
    %182 = arith.negf %181 : vector<2x32xf32>
    %183 = math.exp %182 : vector<2x32xf32>
    %cst_59 = arith.constant 1.000000e+00 : f32
    %184 = vector.broadcast %cst_59 : f32 to vector<2x32xf32>
    %185 = arith.addf %184, %183 : vector<2x32xf32>
    %186 = arith.divf %184, %185 : vector<2x32xf32>
    %187 = vector.extract_strided_slice %177 {offsets = [0, 32], sizes = [2, 32], strides = [1, 1]} : vector<2x96xf32> to vector<2x32xf32>
    %188 = vector.extract_strided_slice %178 {offsets = [0, 32], sizes = [2, 32], strides = [1, 1]} : vector<2x96xf32> to vector<2x32xf32>
    %189 = arith.addf %187, %188 : vector<2x32xf32>
    %190 = arith.negf %189 : vector<2x32xf32>
    %191 = math.exp %190 : vector<2x32xf32>
    %cst_60 = arith.constant 1.000000e+00 : f32
    %192 = vector.broadcast %cst_60 : f32 to vector<2x32xf32>
    %193 = arith.addf %192, %191 : vector<2x32xf32>
    %194 = arith.divf %192, %193 : vector<2x32xf32>
    %195 = vector.extract_strided_slice %177 {offsets = [0, 64], sizes = [2, 32], strides = [1, 1]} : vector<2x96xf32> to vector<2x32xf32>
    %196 = vector.extract_strided_slice %178 {offsets = [0, 64], sizes = [2, 32], strides = [1, 1]} : vector<2x96xf32> to vector<2x32xf32>
    %197 = arith.addf %196, %14 : vector<2x32xf32>
    %198 = arith.mulf %186, %197 : vector<2x32xf32>
    %199 = arith.addf %195, %198 : vector<2x32xf32>
    %200 = math.tanh %199 : vector<2x32xf32>
    %cst_61 = arith.constant 1.000000e+00 : f32
    %201 = vector.broadcast %cst_61 : f32 to vector<2x32xf32>
    %202 = arith.subf %201, %194 : vector<2x32xf32>
    %203 = arith.mulf %202, %200 : vector<2x32xf32>
    %204 = arith.mulf %194, %167 : vector<2x32xf32>
    %205 = arith.addf %203, %204 : vector<2x32xf32>
    %c0_62 = arith.constant 0 : index
    %206 = arith.index_cast %173 : i32 to index
    %c0_63 = arith.constant 0 : index
    %c0_64 = arith.constant 0 : index
    %207 = vector.load %arg6[%c0_62, %206, %c0_63, %c0_64] : memref<1x8x2x32xf32, #tpu.memory_space<vmem>>, vector<1x1x2x32xf32>
    %208 = vector.shape_cast %207 : vector<1x1x2x32xf32> to vector<2x32xf32>
    %209 = vector.shape_cast %205 : vector<2x32xf32> to vector<1x1x2x32xf32>
    tpu.vector_store %arg6[%c0_62, %206, %c0_63, %c0_64], %209 {strides = array<i32>} : memref<1x8x2x32xf32, #tpu.memory_space<vmem>>, vector<1x1x2x32xf32>,
    %c5_i32 = arith.constant 5 : i32
    %210 = arith.muli %18, %c5_i32 : i32
    %211 = arith.addi %16, %210 : i32
    %c2_i32_65 = arith.constant 2 : i32
    %212 = arith.muli %211, %c2_i32_65 : i32
    %213 = tpu.assume_multiple %212, 2 : i32
    %214 = arith.index_cast %213 : i32 to index
    %c0_66 = arith.constant 0 : index
    %215 = vector.load %arg7[%214, %c0_66] : memref<16x96xf32, #tpu.memory_space<vmem>>, vector<2x96xf32>
    %cst_67 = arith.constant dense<0.000000e+00> : vector<2x96xf32>
    %216 = tpu.matmul %205, %10, %cst_67 {dimension_numbers = #tpu.dot_dimension_numbers<[1], [0], [0], [1], [0, 0, 1, 1], [], []>} : vector<2x32xf32>, vector<32x96xf32>, vector<2x96xf32> -> vector<2x96xf32>
    %217 = vector.extract_strided_slice %215 {offsets = [0, 0], sizes = [2, 32], strides = [1, 1]} : vector<2x96xf32> to vector<2x32xf32>
    %218 = vector.extract_strided_slice %216 {offsets = [0, 0], sizes = [2, 32], strides = [1, 1]} : vector<2x96xf32> to vector<2x32xf32>
    %219 = arith.addf %217, %218 : vector<2x32xf32>
    %220 = arith.negf %219 : vector<2x32xf32>
    %221 = math.exp %220 : vector<2x32xf32>
    %cst_68 = arith.constant 1.000000e+00 : f32
    %222 = vector.broadcast %cst_68 : f32 to vector<2x32xf32>
    %223 = arith.addf %222, %221 : vector<2x32xf32>
    %224 = arith.divf %222, %223 : vector<2x32xf32>
    %225 = vector.extract_strided_slice %215 {offsets = [0, 32], sizes = [2, 32], strides = [1, 1]} : vector<2x96xf32> to vector<2x32xf32>
    %226 = vector.extract_strided_slice %216 {offsets = [0, 32], sizes = [2, 32], strides = [1, 1]} : vector<2x96xf32> to vector<2x32xf32>
    %227 = arith.addf %225, %226 : vector<2x32xf32>
    %228 = arith.negf %227 : vector<2x32xf32>
    %229 = math.exp %228 : vector<2x32xf32>
    %cst_69 = arith.constant 1.000000e+00 : f32
    %230 = vector.broadcast %cst_69 : f32 to vector<2x32xf32>
    %231 = arith.addf %230, %229 : vector<2x32xf32>
    %232 = arith.divf %230, %231 : vector<2x32xf32>
    %233 = vector.extract_strided_slice %215 {offsets = [0, 64], sizes = [2, 32], strides = [1, 1]} : vector<2x96xf32> to vector<2x32xf32>
    %234 = vector.extract_strided_slice %216 {offsets = [0, 64], sizes = [2, 32], strides = [1, 1]} : vector<2x96xf32> to vector<2x32xf32>
    %235 = arith.addf %234, %14 : vector<2x32xf32>
    %236 = arith.mulf %224, %235 : vector<2x32xf32>
    %237 = arith.addf %233, %236 : vector<2x32xf32>
    %238 = math.tanh %237 : vector<2x32xf32>
    %cst_70 = arith.constant 1.000000e+00 : f32
    %239 = vector.broadcast %cst_70 : f32 to vector<2x32xf32>
    %240 = arith.subf %239, %232 : vector<2x32xf32>
    %241 = arith.mulf %240, %238 : vector<2x32xf32>
    %242 = arith.mulf %232, %205 : vector<2x32xf32>
    %243 = arith.addf %241, %242 : vector<2x32xf32>
    %c0_71 = arith.constant 0 : index
    %244 = arith.index_cast %211 : i32 to index
    %c0_72 = arith.constant 0 : index
    %c0_73 = arith.constant 0 : index
    %245 = vector.load %arg6[%c0_71, %244, %c0_72, %c0_73] : memref<1x8x2x32xf32, #tpu.memory_space<vmem>>, vector<1x1x2x32xf32>
    %246 = vector.shape_cast %245 : vector<1x1x2x32xf32> to vector<2x32xf32>
    %247 = vector.shape_cast %243 : vector<2x32xf32> to vector<1x1x2x32xf32>
    tpu.vector_store %arg6[%c0_71, %244, %c0_72, %c0_73], %247 {strides = array<i32>} : memref<1x8x2x32xf32, #tpu.memory_space<vmem>>, vector<1x1x2x32xf32>,
    %c6_i32 = arith.constant 6 : i32
    %248 = arith.muli %18, %c6_i32 : i32
    %249 = arith.addi %16, %248 : i32
    %c2_i32_74 = arith.constant 2 : i32
    %250 = arith.muli %249, %c2_i32_74 : i32
    %251 = tpu.assume_multiple %250, 2 : i32
    %252 = arith.index_cast %251 : i32 to index
    %c0_75 = arith.constant 0 : index
    %253 = vector.load %arg7[%252, %c0_75] : memref<16x96xf32, #tpu.memory_space<vmem>>, vector<2x96xf32>
    %cst_76 = arith.constant dense<0.000000e+00> : vector<2x96xf32>
    %254 = tpu.matmul %243, %10, %cst_76 {dimension_numbers = #tpu.dot_dimension_numbers<[1], [0], [0], [1], [0, 0, 1, 1], [], []>} : vector<2x32xf32>, vector<32x96xf32>, vector<2x96xf32> -> vector<2x96xf32>
    %255 = vector.extract_strided_slice %253 {offsets = [0, 0], sizes = [2, 32], strides = [1, 1]} : vector<2x96xf32> to vector<2x32xf32>
    %256 = vector.extract_strided_slice %254 {offsets = [0, 0], sizes = [2, 32], strides = [1, 1]} : vector<2x96xf32> to vector<2x32xf32>
    %257 = arith.addf %255, %256 : vector<2x32xf32>
    %258 = arith.negf %257 : vector<2x32xf32>
    %259 = math.exp %258 : vector<2x32xf32>
    %cst_77 = arith.constant 1.000000e+00 : f32
    %260 = vector.broadcast %cst_77 : f32 to vector<2x32xf32>
    %261 = arith.addf %260, %259 : vector<2x32xf32>
    %262 = arith.divf %260, %261 : vector<2x32xf32>
    %263 = vector.extract_strided_slice %253 {offsets = [0, 32], sizes = [2, 32], strides = [1, 1]} : vector<2x96xf32> to vector<2x32xf32>
    %264 = vector.extract_strided_slice %254 {offsets = [0, 32], sizes = [2, 32], strides = [1, 1]} : vector<2x96xf32> to vector<2x32xf32>
    %265 = arith.addf %263, %264 : vector<2x32xf32>
    %266 = arith.negf %265 : vector<2x32xf32>
    %267 = math.exp %266 : vector<2x32xf32>
    %cst_78 = arith.constant 1.000000e+00 : f32
    %268 = vector.broadcast %cst_78 : f32 to vector<2x32xf32>
    %269 = arith.addf %268, %267 : vector<2x32xf32>
    %270 = arith.divf %268, %269 : vector<2x32xf32>
    %271 = vector.extract_strided_slice %253 {offsets = [0, 64], sizes = [2, 32], strides = [1, 1]} : vector<2x96xf32> to vector<2x32xf32>
    %272 = vector.extract_strided_slice %254 {offsets = [0, 64], sizes = [2, 32], strides = [1, 1]} : vector<2x96xf32> to vector<2x32xf32>
    %273 = arith.addf %272, %14 : vector<2x32xf32>
    %274 = arith.mulf %262, %273 : vector<2x32xf32>
    %275 = arith.addf %271, %274 : vector<2x32xf32>
    %276 = math.tanh %275 : vector<2x32xf32>
    %cst_79 = arith.constant 1.000000e+00 : f32
    %277 = vector.broadcast %cst_79 : f32 to vector<2x32xf32>
    %278 = arith.subf %277, %270 : vector<2x32xf32>
    %279 = arith.mulf %278, %276 : vector<2x32xf32>
    %280 = arith.mulf %270, %243 : vector<2x32xf32>
    %281 = arith.addf %279, %280 : vector<2x32xf32>
    %c0_80 = arith.constant 0 : index
    %282 = arith.index_cast %249 : i32 to index
    %c0_81 = arith.constant 0 : index
    %c0_82 = arith.constant 0 : index
    %283 = vector.load %arg6[%c0_80, %282, %c0_81, %c0_82] : memref<1x8x2x32xf32, #tpu.memory_space<vmem>>, vector<1x1x2x32xf32>
    %284 = vector.shape_cast %283 : vector<1x1x2x32xf32> to vector<2x32xf32>
    %285 = vector.shape_cast %281 : vector<2x32xf32> to vector<1x1x2x32xf32>
    tpu.vector_store %arg6[%c0_80, %282, %c0_81, %c0_82], %285 {strides = array<i32>} : memref<1x8x2x32xf32, #tpu.memory_space<vmem>>, vector<1x1x2x32xf32>,
    %c7_i32_83 = arith.constant 7 : i32
    %286 = arith.muli %18, %c7_i32_83 : i32
    %287 = arith.addi %16, %286 : i32
    %c2_i32_84 = arith.constant 2 : i32
    %288 = arith.muli %287, %c2_i32_84 : i32
    %289 = tpu.assume_multiple %288, 2 : i32
    %290 = arith.index_cast %289 : i32 to index
    %c0_85 = arith.constant 0 : index
    %291 = vector.load %arg7[%290, %c0_85] : memref<16x96xf32, #tpu.memory_space<vmem>>, vector<2x96xf32>
    %cst_86 = arith.constant dense<0.000000e+00> : vector<2x96xf32>
    %292 = tpu.matmul %281, %10, %cst_86 {dimension_numbers = #tpu.dot_dimension_numbers<[1], [0], [0], [1], [0, 0, 1, 1], [], []>} : vector<2x32xf32>, vector<32x96xf32>, vector<2x96xf32> -> vector<2x96xf32>
    %293 = vector.extract_strided_slice %291 {offsets = [0, 0], sizes = [2, 32], strides = [1, 1]} : vector<2x96xf32> to vector<2x32xf32>
    %294 = vector.extract_strided_slice %292 {offsets = [0, 0], sizes = [2, 32], strides = [1, 1]} : vector<2x96xf32> to vector<2x32xf32>
    %295 = arith.addf %293, %294 : vector<2x32xf32>
    %296 = arith.negf %295 : vector<2x32xf32>
    %297 = math.exp %296 : vector<2x32xf32>
    %cst_87 = arith.constant 1.000000e+00 : f32
    %298 = vector.broadcast %cst_87 : f32 to vector<2x32xf32>
    %299 = arith.addf %298, %297 : vector<2x32xf32>
    %300 = arith.divf %298, %299 : vector<2x32xf32>
    %301 = vector.extract_strided_slice %291 {offsets = [0, 32], sizes = [2, 32], strides = [1, 1]} : vector<2x96xf32> to vector<2x32xf32>
    %302 = vector.extract_strided_slice %292 {offsets = [0, 32], sizes = [2, 32], strides = [1, 1]} : vector<2x96xf32> to vector<2x32xf32>
    %303 = arith.addf %301, %302 : vector<2x32xf32>
    %304 = arith.negf %303 : vector<2x32xf32>
    %305 = math.exp %304 : vector<2x32xf32>
    %cst_88 = arith.constant 1.000000e+00 : f32
    %306 = vector.broadcast %cst_88 : f32 to vector<2x32xf32>
    %307 = arith.addf %306, %305 : vector<2x32xf32>
    %308 = arith.divf %306, %307 : vector<2x32xf32>
    %309 = vector.extract_strided_slice %291 {offsets = [0, 64], sizes = [2, 32], strides = [1, 1]} : vector<2x96xf32> to vector<2x32xf32>
    %310 = vector.extract_strided_slice %292 {offsets = [0, 64], sizes = [2, 32], strides = [1, 1]} : vector<2x96xf32> to vector<2x32xf32>
    %311 = arith.addf %310, %14 : vector<2x32xf32>
    %312 = arith.mulf %300, %311 : vector<2x32xf32>
    %313 = arith.addf %309, %312 : vector<2x32xf32>
    %314 = math.tanh %313 : vector<2x32xf32>
    %cst_89 = arith.constant 1.000000e+00 : f32
    %315 = vector.broadcast %cst_89 : f32 to vector<2x32xf32>
    %316 = arith.subf %315, %308 : vector<2x32xf32>
    %317 = arith.mulf %316, %314 : vector<2x32xf32>
    %318 = arith.mulf %308, %281 : vector<2x32xf32>
    %319 = arith.addf %317, %318 : vector<2x32xf32>
    %c0_90 = arith.constant 0 : index
    %320 = arith.index_cast %287 : i32 to index
    %c0_91 = arith.constant 0 : index
    %c0_92 = arith.constant 0 : index
    %321 = vector.load %arg6[%c0_90, %320, %c0_91, %c0_92] : memref<1x8x2x32xf32, #tpu.memory_space<vmem>>, vector<1x1x2x32xf32>
    %322 = vector.shape_cast %321 : vector<1x1x2x32xf32> to vector<2x32xf32>
    %323 = vector.shape_cast %319 : vector<2x32xf32> to vector<1x1x2x32xf32>
    tpu.vector_store %arg6[%c0_90, %320, %c0_91, %c0_92], %323 {strides = array<i32>} : memref<1x8x2x32xf32, #tpu.memory_space<vmem>>, vector<1x1x2x32xf32>,
    %c8_i32 = arith.constant 8 : i32
    return
  }
  func.func @transform_0(%arg0: i32) -> (i32, i32) {
    %c0_i32 = arith.constant 0 : i32
    %c0_i32_0 = arith.constant 0 : i32
    %c0_i32_1 = arith.constant 0 : i32
    return %c0_i32, %c0_i32_0 : i32, i32
  }
  func.func @transform_1(%arg0: i32) -> (i32, i32, i32) {
    %c0_i32 = arith.constant 0 : i32
    %c0_i32_0 = arith.constant 0 : i32
    %c0_i32_1 = arith.constant 0 : i32
    return %arg0, %c0_i32, %c0_i32_0 : i32, i32, i32
  }
  func.func @transform_2(%arg0: i32) -> (i32, i32, i32) {
    %c0_i32 = arith.constant 0 : i32
    %c0_i32_0 = arith.constant 0 : i32
    %c0_i32_1 = arith.constant 0 : i32
    return %arg0, %c0_i32, %c0_i32_0 : i32, i32, i32
  }
  func.func @transform_3(%arg0: i32) -> (i32, i32, i32) {
    %c0_i32 = arith.constant 0 : i32
    %c0_i32_0 = arith.constant 0 : i32
    %c0_i32_1 = arith.constant 0 : i32
    return %arg0, %c0_i32, %c0_i32_0 : i32, i32, i32
  }
  func.func @transform_4(%arg0: i32) -> (i32, i32, i32) {
    %c0_i32 = arith.constant 0 : i32
    %c0_i32_0 = arith.constant 0 : i32
    %c0_i32_1 = arith.constant 0 : i32
    return %arg0, %c0_i32, %c0_i32_0 : i32, i32, i32
  }
  func.func @transform_5(%arg0: i32) -> (i32, i32, i32, i32) {
    %c0_i32 = arith.constant 0 : i32
    %c0_i32_0 = arith.constant 0 : i32
    %c0_i32_1 = arith.constant 0 : i32
    %c0_i32_2 = arith.constant 0 : i32
    return %arg0, %c0_i32, %c0_i32_0, %c0_i32_1 : i32, i32, i32, i32
  }
}

module attributes {stable_mosaic.version = 11 : i64} {
  func.func @fc_kernel(%arg0: memref<2x2x32xf32, #tpu.memory_space<vmem>>, %arg1: memref<2x32x4xf32, #tpu.memory_space<vmem>>, %arg2: memref<1x4xf32, #tpu.memory_space<vmem>>, %arg3: memref<2x4xf32, #tpu.memory_space<vmem>>) attributes {dimension_semantics = [], scalar_prefetch = 0 : i64, scratch_operands = 0 : i64, tpu.core_type = #tpu.core_type<tc>} {
    %c0 = arith.constant 0 : index
    %c0_0 = arith.constant 0 : index
    %c0_1 = arith.constant 0 : index
    %0 = vector.load %arg0[%c0, %c0_0, %c0_1] : memref<2x2x32xf32, #tpu.memory_space<vmem>>, vector<1x2x32xf32>
    %1 = vector.shape_cast %0 : vector<1x2x32xf32> to vector<2x32xf32>
    %c0_2 = arith.constant 0 : index
    %c0_3 = arith.constant 0 : index
    %c0_4 = arith.constant 0 : index
    %2 = vector.load %arg1[%c0_2, %c0_3, %c0_4] : memref<2x32x4xf32, #tpu.memory_space<vmem>>, vector<1x32x4xf32>
    %3 = vector.shape_cast %2 : vector<1x32x4xf32> to vector<32x4xf32>
    %cst = arith.constant dense<0.000000e+00> : vector<2x4xf32>
    %4 = tpu.matmul %1, %3, %cst {dimension_numbers = #tpu.dot_dimension_numbers<[1], [0], [0], [1], [0, 0, 1, 1], [], []>} : vector<2x32xf32>, vector<32x4xf32>, vector<2x4xf32> -> vector<2x4xf32>
    %c1 = arith.constant 1 : index
    %c0_5 = arith.constant 0 : index
    %c0_6 = arith.constant 0 : index
    %5 = vector.load %arg0[%c1, %c0_5, %c0_6] : memref<2x2x32xf32, #tpu.memory_space<vmem>>, vector<1x2x32xf32>
    %6 = vector.shape_cast %5 : vector<1x2x32xf32> to vector<2x32xf32>
    %c1_7 = arith.constant 1 : index
    %c0_8 = arith.constant 0 : index
    %c0_9 = arith.constant 0 : index
    %7 = vector.load %arg1[%c1_7, %c0_8, %c0_9] : memref<2x32x4xf32, #tpu.memory_space<vmem>>, vector<1x32x4xf32>
    %8 = vector.shape_cast %7 : vector<1x32x4xf32> to vector<32x4xf32>
    %cst_10 = arith.constant dense<0.000000e+00> : vector<2x4xf32>
    %9 = tpu.matmul %6, %8, %cst_10 {dimension_numbers = #tpu.dot_dimension_numbers<[1], [0], [0], [1], [0, 0, 1, 1], [], []>} : vector<2x32xf32>, vector<32x4xf32>, vector<2x4xf32> -> vector<2x4xf32>
    %10 = arith.addf %4, %9 : vector<2x4xf32>
    %c0_11 = arith.constant 0 : index
    %c0_12 = arith.constant 0 : index
    %11 = vector.load %arg2[%c0_11, %c0_12] : memref<1x4xf32, #tpu.memory_space<vmem>>, vector<1x4xf32>
    %12 = vector.broadcast %11 : vector<1x4xf32> to vector<2x4xf32>
    %13 = arith.addf %10, %12 : vector<2x4xf32>
    %c0_13 = arith.constant 0 : index
    %c0_14 = arith.constant 0 : index
    %14 = vector.load %arg3[%c0_13, %c0_14] : memref<2x4xf32, #tpu.memory_space<vmem>>, vector<2x4xf32>
    tpu.vector_store %arg3[%c0_13, %c0_14], %13 {strides = array<i32>} : memref<2x4xf32, #tpu.memory_space<vmem>>, vector<2x4xf32>,
    return
  }
}

module attributes {stable_mosaic.version = 11 : i64} {
  func.func @bigru_layer_kernel(%arg0: i32, %arg1: memref<16x64xf32, #tpu.memory_space<vmem>>, %arg2: memref<1x64x96xf32, #tpu.memory_space<vmem>>, %arg3: memref<1x32x96xf32, #tpu.memory_space<vmem>>, %arg4: memref<1x1x96xf32, #tpu.memory_space<vmem>>, %arg5: memref<1x1x32xf32, #tpu.memory_space<vmem>>, %arg6: memref<1x8x2x32xf32, #tpu.memory_space<vmem>>, %arg7: memref<16x96xf32, #tpu.memory_space<vmem>>) attributes {dimension_semantics = [#tpu.dimension_semantics<parallel>], iteration_bounds = array<i64: 2>, scalar_prefetch = 0 : i64, scratch_operands = 1 : i64, tpu.core_type = #tpu.core_type<tc>, window_params = [{pipeline_mode = #tpu.pipeline_mode<synchronous>, transform_indices = @transform_0, window_bounds = array<i64: 16, 64>}, {transform_indices = @transform_1, window_bounds = array<i64: 1, 64, 96>}, {transform_indices = @transform_2, window_bounds = array<i64: 1, 32, 96>}, {transform_indices = @transform_3, window_bounds = array<i64: 1, 1, 96>}, {transform_indices = @transform_4, window_bounds = array<i64: 1, 1, 32>}, {transform_indices = @transform_5, window_bounds = array<i64: 1, 8, 2, 32>}]} {
    %c0 = arith.constant 0 : index
    %c0_0 = arith.constant 0 : index
    %0 = vector.load %arg1[%c0, %c0_0] : memref<16x64xf32, #tpu.memory_space<vmem>>, vector<16x64xf32>
    %c0_1 = arith.constant 0 : index
    %c0_2 = arith.constant 0 : index
    %c0_3 = arith.constant 0 : index
    %1 = vector.load %arg2[%c0_1, %c0_2, %c0_3] : memref<1x64x96xf32, #tpu.memory_space<vmem>>, vector<1x64x96xf32>
    %2 = vector.shape_cast %1 : vector<1x64x96xf32> to vector<64x96xf32>
    %cst = arith.constant dense<0.000000e+00> : vector<16x96xf32>
    %3 = tpu.matmul %0, %2, %cst {dimension_numbers = #tpu.dot_dimension_numbers<[1], [0], [0], [1], [0, 0, 1, 1], [], []>} : vector<16x64xf32>, vector<64x96xf32>, vector<16x96xf32> -> vector<16x96xf32>
    %c0_4 = arith.constant 0 : index
    %c0_5 = arith.constant 0 : index
    %c0_6 = arith.constant 0 : index
    %4 = vector.load %arg4[%c0_4, %c0_5, %c0_6] : memref<1x1x96xf32, #tpu.memory_space<vmem>>, vector<1x1x96xf32>
    %5 = vector.shape_cast %4 : vector<1x1x96xf32> to vector<1x96xf32>
    %6 = vector.broadcast %5 : vector<1x96xf32> to vector<16x96xf32>
    %7 = arith.addf %3, %6 : vector<16x96xf32>
    %c0_7 = arith.constant 0 : index
    %c0_8 = arith.constant 0 : index
    %8 = vector.load %arg7[%c0_7, %c0_8] : memref<16x96xf32, #tpu.memory_space<vmem>>, vector<16x96xf32>
    tpu.vector_store %arg7[%c0_7, %c0_8], %7 {strides = array<i32>} : memref<16x96xf32, #tpu.memory_space<vmem>>, vector<16x96xf32>,
    %c0_9 = arith.constant 0 : index
    %c0_10 = arith.constant 0 : index
    %c0_11 = arith.constant 0 : index
    %9 = vector.load %arg3[%c0_9, %c0_10, %c0_11] : memref<1x32x96xf32, #tpu.memory_space<vmem>>, vector<1x32x96xf32>
    %10 = vector.shape_cast %9 : vector<1x32x96xf32> to vector<32x96xf32>
    %c0_12 = arith.constant 0 : index
    %c0_13 = arith.constant 0 : index
    %c0_14 = arith.constant 0 : index
    %11 = vector.load %arg5[%c0_12, %c0_13, %c0_14] : memref<1x1x32xf32, #tpu.memory_space<vmem>>, vector<1x1x32xf32>
    %12 = vector.shape_cast %11 : vector<1x1x32xf32> to vector<1x32xf32>
    %13 = vector.shape_cast %12 : vector<1x32xf32> to vector<1x32xf32>
    %14 = vector.broadcast %13 : vector<1x32xf32> to vector<2x32xf32>
    %c0_i32 = arith.constant 0 : i32
    %15 = arith.cmpi eq, %arg0, %c0_i32 : i32
    %c0_i32_15 = arith.constant 0 : i32
    %c7_i32 = arith.constant 7 : i32
    %16 = arith.select %15, %c0_i32_15, %c7_i32 : i32
    %c0_i32_16 = arith.constant 0 : i32
    %17 = arith.cmpi eq, %arg0, %c0_i32_16 : i32
    %c1_i32 = arith.constant 1 : i32
    %c-1_i32 = arith.constant -1 : i32
    %18 = arith.select %17, %c1_i32, %c-1_i32 : i32
    %cst_17 = arith.constant 0.000000e+00 : f32
    %19 = vector.broadcast %cst_17 : f32 to vector<2x32xf32>
    %c0_i32_18 = arith.constant 0 : i32
    %20 = arith.muli %18, %c0_i32_18 : i32
    %21 = arith.addi %16, %20 : i32
    %c2_i32 = arith.constant 2 : i32
    %22 = arith.muli %21, %c2_i32 : i32
    %23 = tpu.assume_multiple %22, 2 : i32
    %24 = arith.index_cast %23 : i32 to index
    %c0_19 = arith.constant 0 : index
    %25 = vector.load %arg7[%24, %c0_19] : memref<16x96xf32, #tpu.memory_space<vmem>>, vector<2x96xf32>
    %cst_20 = arith.constant dense<0.000000e+00> : vector<2x96xf32>
    %26 = tpu.matmul %19, %10, %cst_20 {dimension_numbers = #tpu.dot_dimension_numbers<[1], [0], [0], [1], [0, 0, 1, 1], [], []>} : vector<2x32xf32>, vector<32x96xf32>, vector<2x96xf32> -> vector<2x96xf32>
    %27 = vector.extract_strided_slice %25 {offsets = [0, 0], sizes = [2, 32], strides = [1, 1]} : vector<2x96xf32> to vector<2x32xf32>
    %28 = vector.extract_strided_slice %26 {offsets = [0, 0], sizes = [2, 32], strides = [1, 1]} : vector<2x96xf32> to vector<2x32xf32>
    %29 = arith.addf %27, %28 : vector<2x32xf32>
    %30 = arith.negf %29 : vector<2x32xf32>
    %31 = math.exp %30 : vector<2x32xf32>
    %cst_21 = arith.constant 1.000000e+00 : f32
    %32 = vector.broadcast %cst_21 : f32 to vector<2x32xf32>
    %33 = arith.addf %32, %31 : vector<2x32xf32>
    %34 = arith.divf %32, %33 : vector<2x32xf32>
    %35 = vector.extract_strided_slice %25 {offsets = [0, 32], sizes = [2, 32], strides = [1, 1]} : vector<2x96xf32> to vector<2x32xf32>
    %36 = vector.extract_strided_slice %26 {offsets = [0, 32], sizes = [2, 32], strides = [1, 1]} : vector<2x96xf32> to vector<2x32xf32>
    %37 = arith.addf %35, %36 : vector<2x32xf32>
    %38 = arith.negf %37 : vector<2x32xf32>
    %39 = math.exp %38 : vector<2x32xf32>
    %cst_22 = arith.constant 1.000000e+00 : f32
    %40 = vector.broadcast %cst_22 : f32 to vector<2x32xf32>
    %41 = arith.addf %40, %39 : vector<2x32xf32>
    %42 = arith.divf %40, %41 : vector<2x32xf32>
    %43 = vector.extract_strided_slice %25 {offsets = [0, 64], sizes = [2, 32], strides = [1, 1]} : vector<2x96xf32> to vector<2x32xf32>
    %44 = vector.extract_strided_slice %26 {offsets = [0, 64], sizes = [2, 32], strides = [1, 1]} : vector<2x96xf32> to vector<2x32xf32>
    %45 = arith.addf %44, %14 : vector<2x32xf32>
    %46 = arith.mulf %34, %45 : vector<2x32xf32>
    %47 = arith.addf %43, %46 : vector<2x32xf32>
    %48 = math.tanh %47 : vector<2x32xf32>
    %cst_23 = arith.constant 1.000000e+00 : f32
    %49 = vector.broadcast %cst_23 : f32 to vector<2x32xf32>
    %50 = arith.subf %49, %42 : vector<2x32xf32>
    %51 = arith.mulf %50, %48 : vector<2x32xf32>
    %52 = arith.mulf %42, %19 : vector<2x32xf32>
    %53 = arith.addf %51, %52 : vector<2x32xf32>
    %c0_24 = arith.constant 0 : index
    %54 = arith.index_cast %21 : i32 to index
    %c0_25 = arith.constant 0 : index
    %c0_26 = arith.constant 0 : index
    %55 = vector.load %arg6[%c0_24, %54, %c0_25, %c0_26] : memref<1x8x2x32xf32, #tpu.memory_space<vmem>>, vector<1x1x2x32xf32>
    %56 = vector.shape_cast %55 : vector<1x1x2x32xf32> to vector<2x32xf32>
    %57 = vector.shape_cast %53 : vector<2x32xf32> to vector<1x1x2x32xf32>
    tpu.vector_store %arg6[%c0_24, %54, %c0_25, %c0_26], %57 {strides = array<i32>} : memref<1x8x2x32xf32, #tpu.memory_space<vmem>>, vector<1x1x2x32xf32>,
    %c1_i32_27 = arith.constant 1 : i32
    %58 = arith.muli %18, %c1_i32_27 : i32
    %59 = arith.addi %16, %58 : i32
    %c2_i32_28 = arith.constant 2 : i32
    %60 = arith.muli %59, %c2_i32_28 : i32
    %61 = tpu.assume_multiple %60, 2 : i32
    %62 = arith.index_cast %61 : i32 to index
    %c0_29 = arith.constant 0 : index
    %63 = vector.load %arg7[%62, %c0_29] : memref<16x96xf32, #tpu.memory_space<vmem>>, vector<2x96xf32>
    %cst_30 = arith.constant dense<0.000000e+00> : vector<2x96xf32>
    %64 = tpu.matmul %53, %10, %cst_30 {dimension_numbers = #tpu.dot_dimension_numbers<[1], [0], [0], [1], [0, 0, 1, 1], [], []>} : vector<2x32xf32>, vector<32x96xf32>, vector<2x96xf32> -> vector<2x96xf32>
    %65 = vector.extract_strided_slice %63 {offsets = [0, 0], sizes = [2, 32], strides = [1, 1]} : vector<2x96xf32> to vector<2x32xf32>
    %66 = vector.extract_strided_slice %64 {offsets = [0, 0], sizes = [2, 32], strides = [1, 1]} : vector<2x96xf32> to vector<2x32xf32>
    %67 = arith.addf %65, %66 : vector<2x32xf32>
    %68 = arith.negf %67 : vector<2x32xf32>
    %69 = math.exp %68 : vector<2x32xf32>
    %cst_31 = arith.constant 1.000000e+00 : f32
    %70 = vector.broadcast %cst_31 : f32 to vector<2x32xf32>
    %71 = arith.addf %70, %69 : vector<2x32xf32>
    %72 = arith.divf %70, %71 : vector<2x32xf32>
    %73 = vector.extract_strided_slice %63 {offsets = [0, 32], sizes = [2, 32], strides = [1, 1]} : vector<2x96xf32> to vector<2x32xf32>
    %74 = vector.extract_strided_slice %64 {offsets = [0, 32], sizes = [2, 32], strides = [1, 1]} : vector<2x96xf32> to vector<2x32xf32>
    %75 = arith.addf %73, %74 : vector<2x32xf32>
    %76 = arith.negf %75 : vector<2x32xf32>
    %77 = math.exp %76 : vector<2x32xf32>
    %cst_32 = arith.constant 1.000000e+00 : f32
    %78 = vector.broadcast %cst_32 : f32 to vector<2x32xf32>
    %79 = arith.addf %78, %77 : vector<2x32xf32>
    %80 = arith.divf %78, %79 : vector<2x32xf32>
    %81 = vector.extract_strided_slice %63 {offsets = [0, 64], sizes = [2, 32], strides = [1, 1]} : vector<2x96xf32> to vector<2x32xf32>
    %82 = vector.extract_strided_slice %64 {offsets = [0, 64], sizes = [2, 32], strides = [1, 1]} : vector<2x96xf32> to vector<2x32xf32>
    %83 = arith.addf %82, %14 : vector<2x32xf32>
    %84 = arith.mulf %72, %83 : vector<2x32xf32>
    %85 = arith.addf %81, %84 : vector<2x32xf32>
    %86 = math.tanh %85 : vector<2x32xf32>
    %cst_33 = arith.constant 1.000000e+00 : f32
    %87 = vector.broadcast %cst_33 : f32 to vector<2x32xf32>
    %88 = arith.subf %87, %80 : vector<2x32xf32>
    %89 = arith.mulf %88, %86 : vector<2x32xf32>
    %90 = arith.mulf %80, %53 : vector<2x32xf32>
    %91 = arith.addf %89, %90 : vector<2x32xf32>
    %c0_34 = arith.constant 0 : index
    %92 = arith.index_cast %59 : i32 to index
    %c0_35 = arith.constant 0 : index
    %c0_36 = arith.constant 0 : index
    %93 = vector.load %arg6[%c0_34, %92, %c0_35, %c0_36] : memref<1x8x2x32xf32, #tpu.memory_space<vmem>>, vector<1x1x2x32xf32>
    %94 = vector.shape_cast %93 : vector<1x1x2x32xf32> to vector<2x32xf32>
    %95 = vector.shape_cast %91 : vector<2x32xf32> to vector<1x1x2x32xf32>
    tpu.vector_store %arg6[%c0_34, %92, %c0_35, %c0_36], %95 {strides = array<i32>} : memref<1x8x2x32xf32, #tpu.memory_space<vmem>>, vector<1x1x2x32xf32>,
    %c2_i32_37 = arith.constant 2 : i32
    %96 = arith.muli %18, %c2_i32_37 : i32
    %97 = arith.addi %16, %96 : i32
    %c2_i32_38 = arith.constant 2 : i32
    %98 = arith.muli %97, %c2_i32_38 : i32
    %99 = tpu.assume_multiple %98, 2 : i32
    %100 = arith.index_cast %99 : i32 to index
    %c0_39 = arith.constant 0 : index
    %101 = vector.load %arg7[%100, %c0_39] : memref<16x96xf32, #tpu.memory_space<vmem>>, vector<2x96xf32>
    %cst_40 = arith.constant dense<0.000000e+00> : vector<2x96xf32>
    %102 = tpu.matmul %91, %10, %cst_40 {dimension_numbers = #tpu.dot_dimension_numbers<[1], [0], [0], [1], [0, 0, 1, 1], [], []>} : vector<2x32xf32>, vector<32x96xf32>, vector<2x96xf32> -> vector<2x96xf32>
    %103 = vector.extract_strided_slice %101 {offsets = [0, 0], sizes = [2, 32], strides = [1, 1]} : vector<2x96xf32> to vector<2x32xf32>
    %104 = vector.extract_strided_slice %102 {offsets = [0, 0], sizes = [2, 32], strides = [1, 1]} : vector<2x96xf32> to vector<2x32xf32>
    %105 = arith.addf %103, %104 : vector<2x32xf32>
    %106 = arith.negf %105 : vector<2x32xf32>
    %107 = math.exp %106 : vector<2x32xf32>
    %cst_41 = arith.constant 1.000000e+00 : f32
    %108 = vector.broadcast %cst_41 : f32 to vector<2x32xf32>
    %109 = arith.addf %108, %107 : vector<2x32xf32>
    %110 = arith.divf %108, %109 : vector<2x32xf32>
    %111 = vector.extract_strided_slice %101 {offsets = [0, 32], sizes = [2, 32], strides = [1, 1]} : vector<2x96xf32> to vector<2x32xf32>
    %112 = vector.extract_strided_slice %102 {offsets = [0, 32], sizes = [2, 32], strides = [1, 1]} : vector<2x96xf32> to vector<2x32xf32>
    %113 = arith.addf %111, %112 : vector<2x32xf32>
    %114 = arith.negf %113 : vector<2x32xf32>
    %115 = math.exp %114 : vector<2x32xf32>
    %cst_42 = arith.constant 1.000000e+00 : f32
    %116 = vector.broadcast %cst_42 : f32 to vector<2x32xf32>
    %117 = arith.addf %116, %115 : vector<2x32xf32>
    %118 = arith.divf %116, %117 : vector<2x32xf32>
    %119 = vector.extract_strided_slice %101 {offsets = [0, 64], sizes = [2, 32], strides = [1, 1]} : vector<2x96xf32> to vector<2x32xf32>
    %120 = vector.extract_strided_slice %102 {offsets = [0, 64], sizes = [2, 32], strides = [1, 1]} : vector<2x96xf32> to vector<2x32xf32>
    %121 = arith.addf %120, %14 : vector<2x32xf32>
    %122 = arith.mulf %110, %121 : vector<2x32xf32>
    %123 = arith.addf %119, %122 : vector<2x32xf32>
    %124 = math.tanh %123 : vector<2x32xf32>
    %cst_43 = arith.constant 1.000000e+00 : f32
    %125 = vector.broadcast %cst_43 : f32 to vector<2x32xf32>
    %126 = arith.subf %125, %118 : vector<2x32xf32>
    %127 = arith.mulf %126, %124 : vector<2x32xf32>
    %128 = arith.mulf %118, %91 : vector<2x32xf32>
    %129 = arith.addf %127, %128 : vector<2x32xf32>
    %c0_44 = arith.constant 0 : index
    %130 = arith.index_cast %97 : i32 to index
    %c0_45 = arith.constant 0 : index
    %c0_46 = arith.constant 0 : index
    %131 = vector.load %arg6[%c0_44, %130, %c0_45, %c0_46] : memref<1x8x2x32xf32, #tpu.memory_space<vmem>>, vector<1x1x2x32xf32>
    %132 = vector.shape_cast %131 : vector<1x1x2x32xf32> to vector<2x32xf32>
    %133 = vector.shape_cast %129 : vector<2x32xf32> to vector<1x1x2x32xf32>
    tpu.vector_store %arg6[%c0_44, %130, %c0_45, %c0_46], %133 {strides = array<i32>} : memref<1x8x2x32xf32, #tpu.memory_space<vmem>>, vector<1x1x2x32xf32>,
    %c3_i32 = arith.constant 3 : i32
    %134 = arith.muli %18, %c3_i32 : i32
    %135 = arith.addi %16, %134 : i32
    %c2_i32_47 = arith.constant 2 : i32
    %136 = arith.muli %135, %c2_i32_47 : i32
    %137 = tpu.assume_multiple %136, 2 : i32
    %138 = arith.index_cast %137 : i32 to index
    %c0_48 = arith.constant 0 : index
    %139 = vector.load %arg7[%138, %c0_48] : memref<16x96xf32, #tpu.memory_space<vmem>>, vector<2x96xf32>
    %cst_49 = arith.constant dense<0.000000e+00> : vector<2x96xf32>
    %140 = tpu.matmul %129, %10, %cst_49 {dimension_numbers = #tpu.dot_dimension_numbers<[1], [0], [0], [1], [0, 0, 1, 1], [], []>} : vector<2x32xf32>, vector<32x96xf32>, vector<2x96xf32> -> vector<2x96xf32>
    %141 = vector.extract_strided_slice %139 {offsets = [0, 0], sizes = [2, 32], strides = [1, 1]} : vector<2x96xf32> to vector<2x32xf32>
    %142 = vector.extract_strided_slice %140 {offsets = [0, 0], sizes = [2, 32], strides = [1, 1]} : vector<2x96xf32> to vector<2x32xf32>
    %143 = arith.addf %141, %142 : vector<2x32xf32>
    %144 = arith.negf %143 : vector<2x32xf32>
    %145 = math.exp %144 : vector<2x32xf32>
    %cst_50 = arith.constant 1.000000e+00 : f32
    %146 = vector.broadcast %cst_50 : f32 to vector<2x32xf32>
    %147 = arith.addf %146, %145 : vector<2x32xf32>
    %148 = arith.divf %146, %147 : vector<2x32xf32>
    %149 = vector.extract_strided_slice %139 {offsets = [0, 32], sizes = [2, 32], strides = [1, 1]} : vector<2x96xf32> to vector<2x32xf32>
    %150 = vector.extract_strided_slice %140 {offsets = [0, 32], sizes = [2, 32], strides = [1, 1]} : vector<2x96xf32> to vector<2x32xf32>
    %151 = arith.addf %149, %150 : vector<2x32xf32>
    %152 = arith.negf %151 : vector<2x32xf32>
    %153 = math.exp %152 : vector<2x32xf32>
    %cst_51 = arith.constant 1.000000e+00 : f32
    %154 = vector.broadcast %cst_51 : f32 to vector<2x32xf32>
    %155 = arith.addf %154, %153 : vector<2x32xf32>
    %156 = arith.divf %154, %155 : vector<2x32xf32>
    %157 = vector.extract_strided_slice %139 {offsets = [0, 64], sizes = [2, 32], strides = [1, 1]} : vector<2x96xf32> to vector<2x32xf32>
    %158 = vector.extract_strided_slice %140 {offsets = [0, 64], sizes = [2, 32], strides = [1, 1]} : vector<2x96xf32> to vector<2x32xf32>
    %159 = arith.addf %158, %14 : vector<2x32xf32>
    %160 = arith.mulf %148, %159 : vector<2x32xf32>
    %161 = arith.addf %157, %160 : vector<2x32xf32>
    %162 = math.tanh %161 : vector<2x32xf32>
    %cst_52 = arith.constant 1.000000e+00 : f32
    %163 = vector.broadcast %cst_52 : f32 to vector<2x32xf32>
    %164 = arith.subf %163, %156 : vector<2x32xf32>
    %165 = arith.mulf %164, %162 : vector<2x32xf32>
    %166 = arith.mulf %156, %129 : vector<2x32xf32>
    %167 = arith.addf %165, %166 : vector<2x32xf32>
    %c0_53 = arith.constant 0 : index
    %168 = arith.index_cast %135 : i32 to index
    %c0_54 = arith.constant 0 : index
    %c0_55 = arith.constant 0 : index
    %169 = vector.load %arg6[%c0_53, %168, %c0_54, %c0_55] : memref<1x8x2x32xf32, #tpu.memory_space<vmem>>, vector<1x1x2x32xf32>
    %170 = vector.shape_cast %169 : vector<1x1x2x32xf32> to vector<2x32xf32>
    %171 = vector.shape_cast %167 : vector<2x32xf32> to vector<1x1x2x32xf32>
    tpu.vector_store %arg6[%c0_53, %168, %c0_54, %c0_55], %171 {strides = array<i32>} : memref<1x8x2x32xf32, #tpu.memory_space<vmem>>, vector<1x1x2x32xf32>,
    %c4_i32 = arith.constant 4 : i32
    %172 = arith.muli %18, %c4_i32 : i32
    %173 = arith.addi %16, %172 : i32
    %c2_i32_56 = arith.constant 2 : i32
    %174 = arith.muli %173, %c2_i32_56 : i32
    %175 = tpu.assume_multiple %174, 2 : i32
    %176 = arith.index_cast %175 : i32 to index
    %c0_57 = arith.constant 0 : index
    %177 = vector.load %arg7[%176, %c0_57] : memref<16x96xf32, #tpu.memory_space<vmem>>, vector<2x96xf32>
    %cst_58 = arith.constant dense<0.000000e+00> : vector<2x96xf32>
    %178 = tpu.matmul %167, %10, %cst_58 {dimension_numbers = #tpu.dot_dimension_numbers<[1], [0], [0], [1], [0, 0, 1, 1], [], []>} : vector<2x32xf32>, vector<32x96xf32>, vector<2x96xf32> -> vector<2x96xf32>
    %179 = vector.extract_strided_slice %177 {offsets = [0, 0], sizes = [2, 32], strides = [1, 1]} : vector<2x96xf32> to vector<2x32xf32>
    %180 = vector.extract_strided_slice %178 {offsets = [0, 0], sizes = [2, 32], strides = [1, 1]} : vector<2x96xf32> to vector<2x32xf32>
    %181 = arith.addf %179, %180 : vector<2x32xf32>
    %182 = arith.negf %181 : vector<2x32xf32>
    %183 = math.exp %182 : vector<2x32xf32>
    %cst_59 = arith.constant 1.000000e+00 : f32
    %184 = vector.broadcast %cst_59 : f32 to vector<2x32xf32>
    %185 = arith.addf %184, %183 : vector<2x32xf32>
    %186 = arith.divf %184, %185 : vector<2x32xf32>
    %187 = vector.extract_strided_slice %177 {offsets = [0, 32], sizes = [2, 32], strides = [1, 1]} : vector<2x96xf32> to vector<2x32xf32>
    %188 = vector.extract_strided_slice %178 {offsets = [0, 32], sizes = [2, 32], strides = [1, 1]} : vector<2x96xf32> to vector<2x32xf32>
    %189 = arith.addf %187, %188 : vector<2x32xf32>
    %190 = arith.negf %189 : vector<2x32xf32>
    %191 = math.exp %190 : vector<2x32xf32>
    %cst_60 = arith.constant 1.000000e+00 : f32
    %192 = vector.broadcast %cst_60 : f32 to vector<2x32xf32>
    %193 = arith.addf %192, %191 : vector<2x32xf32>
    %194 = arith.divf %192, %193 : vector<2x32xf32>
    %195 = vector.extract_strided_slice %177 {offsets = [0, 64], sizes = [2, 32], strides = [1, 1]} : vector<2x96xf32> to vector<2x32xf32>
    %196 = vector.extract_strided_slice %178 {offsets = [0, 64], sizes = [2, 32], strides = [1, 1]} : vector<2x96xf32> to vector<2x32xf32>
    %197 = arith.addf %196, %14 : vector<2x32xf32>
    %198 = arith.mulf %186, %197 : vector<2x32xf32>
    %199 = arith.addf %195, %198 : vector<2x32xf32>
    %200 = math.tanh %199 : vector<2x32xf32>
    %cst_61 = arith.constant 1.000000e+00 : f32
    %201 = vector.broadcast %cst_61 : f32 to vector<2x32xf32>
    %202 = arith.subf %201, %194 : vector<2x32xf32>
    %203 = arith.mulf %202, %200 : vector<2x32xf32>
    %204 = arith.mulf %194, %167 : vector<2x32xf32>
    %205 = arith.addf %203, %204 : vector<2x32xf32>
    %c0_62 = arith.constant 0 : index
    %206 = arith.index_cast %173 : i32 to index
    %c0_63 = arith.constant 0 : index
    %c0_64 = arith.constant 0 : index
    %207 = vector.load %arg6[%c0_62, %206, %c0_63, %c0_64] : memref<1x8x2x32xf32, #tpu.memory_space<vmem>>, vector<1x1x2x32xf32>
    %208 = vector.shape_cast %207 : vector<1x1x2x32xf32> to vector<2x32xf32>
    %209 = vector.shape_cast %205 : vector<2x32xf32> to vector<1x1x2x32xf32>
    tpu.vector_store %arg6[%c0_62, %206, %c0_63, %c0_64], %209 {strides = array<i32>} : memref<1x8x2x32xf32, #tpu.memory_space<vmem>>, vector<1x1x2x32xf32>,
    %c5_i32 = arith.constant 5 : i32
    %210 = arith.muli %18, %c5_i32 : i32
    %211 = arith.addi %16, %210 : i32
    %c2_i32_65 = arith.constant 2 : i32
    %212 = arith.muli %211, %c2_i32_65 : i32
    %213 = tpu.assume_multiple %212, 2 : i32
    %214 = arith.index_cast %213 : i32 to index
    %c0_66 = arith.constant 0 : index
    %215 = vector.load %arg7[%214, %c0_66] : memref<16x96xf32, #tpu.memory_space<vmem>>, vector<2x96xf32>
    %cst_67 = arith.constant dense<0.000000e+00> : vector<2x96xf32>
    %216 = tpu.matmul %205, %10, %cst_67 {dimension_numbers = #tpu.dot_dimension_numbers<[1], [0], [0], [1], [0, 0, 1, 1], [], []>} : vector<2x32xf32>, vector<32x96xf32>, vector<2x96xf32> -> vector<2x96xf32>
    %217 = vector.extract_strided_slice %215 {offsets = [0, 0], sizes = [2, 32], strides = [1, 1]} : vector<2x96xf32> to vector<2x32xf32>
    %218 = vector.extract_strided_slice %216 {offsets = [0, 0], sizes = [2, 32], strides = [1, 1]} : vector<2x96xf32> to vector<2x32xf32>
    %219 = arith.addf %217, %218 : vector<2x32xf32>
    %220 = arith.negf %219 : vector<2x32xf32>
    %221 = math.exp %220 : vector<2x32xf32>
    %cst_68 = arith.constant 1.000000e+00 : f32
    %222 = vector.broadcast %cst_68 : f32 to vector<2x32xf32>
    %223 = arith.addf %222, %221 : vector<2x32xf32>
    %224 = arith.divf %222, %223 : vector<2x32xf32>
    %225 = vector.extract_strided_slice %215 {offsets = [0, 32], sizes = [2, 32], strides = [1, 1]} : vector<2x96xf32> to vector<2x32xf32>
    %226 = vector.extract_strided_slice %216 {offsets = [0, 32], sizes = [2, 32], strides = [1, 1]} : vector<2x96xf32> to vector<2x32xf32>
    %227 = arith.addf %225, %226 : vector<2x32xf32>
    %228 = arith.negf %227 : vector<2x32xf32>
    %229 = math.exp %228 : vector<2x32xf32>
    %cst_69 = arith.constant 1.000000e+00 : f32
    %230 = vector.broadcast %cst_69 : f32 to vector<2x32xf32>
    %231 = arith.addf %230, %229 : vector<2x32xf32>
    %232 = arith.divf %230, %231 : vector<2x32xf32>
    %233 = vector.extract_strided_slice %215 {offsets = [0, 64], sizes = [2, 32], strides = [1, 1]} : vector<2x96xf32> to vector<2x32xf32>
    %234 = vector.extract_strided_slice %216 {offsets = [0, 64], sizes = [2, 32], strides = [1, 1]} : vector<2x96xf32> to vector<2x32xf32>
    %235 = arith.addf %234, %14 : vector<2x32xf32>
    %236 = arith.mulf %224, %235 : vector<2x32xf32>
    %237 = arith.addf %233, %236 : vector<2x32xf32>
    %238 = math.tanh %237 : vector<2x32xf32>
    %cst_70 = arith.constant 1.000000e+00 : f32
    %239 = vector.broadcast %cst_70 : f32 to vector<2x32xf32>
    %240 = arith.subf %239, %232 : vector<2x32xf32>
    %241 = arith.mulf %240, %238 : vector<2x32xf32>
    %242 = arith.mulf %232, %205 : vector<2x32xf32>
    %243 = arith.addf %241, %242 : vector<2x32xf32>
    %c0_71 = arith.constant 0 : index
    %244 = arith.index_cast %211 : i32 to index
    %c0_72 = arith.constant 0 : index
    %c0_73 = arith.constant 0 : index
    %245 = vector.load %arg6[%c0_71, %244, %c0_72, %c0_73] : memref<1x8x2x32xf32, #tpu.memory_space<vmem>>, vector<1x1x2x32xf32>
    %246 = vector.shape_cast %245 : vector<1x1x2x32xf32> to vector<2x32xf32>
    %247 = vector.shape_cast %243 : vector<2x32xf32> to vector<1x1x2x32xf32>
    tpu.vector_store %arg6[%c0_71, %244, %c0_72, %c0_73], %247 {strides = array<i32>} : memref<1x8x2x32xf32, #tpu.memory_space<vmem>>, vector<1x1x2x32xf32>,
    %c6_i32 = arith.constant 6 : i32
    %248 = arith.muli %18, %c6_i32 : i32
    %249 = arith.addi %16, %248 : i32
    %c2_i32_74 = arith.constant 2 : i32
    %250 = arith.muli %249, %c2_i32_74 : i32
    %251 = tpu.assume_multiple %250, 2 : i32
    %252 = arith.index_cast %251 : i32 to index
    %c0_75 = arith.constant 0 : index
    %253 = vector.load %arg7[%252, %c0_75] : memref<16x96xf32, #tpu.memory_space<vmem>>, vector<2x96xf32>
    %cst_76 = arith.constant dense<0.000000e+00> : vector<2x96xf32>
    %254 = tpu.matmul %243, %10, %cst_76 {dimension_numbers = #tpu.dot_dimension_numbers<[1], [0], [0], [1], [0, 0, 1, 1], [], []>} : vector<2x32xf32>, vector<32x96xf32>, vector<2x96xf32> -> vector<2x96xf32>
    %255 = vector.extract_strided_slice %253 {offsets = [0, 0], sizes = [2, 32], strides = [1, 1]} : vector<2x96xf32> to vector<2x32xf32>
    %256 = vector.extract_strided_slice %254 {offsets = [0, 0], sizes = [2, 32], strides = [1, 1]} : vector<2x96xf32> to vector<2x32xf32>
    %257 = arith.addf %255, %256 : vector<2x32xf32>
    %258 = arith.negf %257 : vector<2x32xf32>
    %259 = math.exp %258 : vector<2x32xf32>
    %cst_77 = arith.constant 1.000000e+00 : f32
    %260 = vector.broadcast %cst_77 : f32 to vector<2x32xf32>
    %261 = arith.addf %260, %259 : vector<2x32xf32>
    %262 = arith.divf %260, %261 : vector<2x32xf32>
    %263 = vector.extract_strided_slice %253 {offsets = [0, 32], sizes = [2, 32], strides = [1, 1]} : vector<2x96xf32> to vector<2x32xf32>
    %264 = vector.extract_strided_slice %254 {offsets = [0, 32], sizes = [2, 32], strides = [1, 1]} : vector<2x96xf32> to vector<2x32xf32>
    %265 = arith.addf %263, %264 : vector<2x32xf32>
    %266 = arith.negf %265 : vector<2x32xf32>
    %267 = math.exp %266 : vector<2x32xf32>
    %cst_78 = arith.constant 1.000000e+00 : f32
    %268 = vector.broadcast %cst_78 : f32 to vector<2x32xf32>
    %269 = arith.addf %268, %267 : vector<2x32xf32>
    %270 = arith.divf %268, %269 : vector<2x32xf32>
    %271 = vector.extract_strided_slice %253 {offsets = [0, 64], sizes = [2, 32], strides = [1, 1]} : vector<2x96xf32> to vector<2x32xf32>
    %272 = vector.extract_strided_slice %254 {offsets = [0, 64], sizes = [2, 32], strides = [1, 1]} : vector<2x96xf32> to vector<2x32xf32>
    %273 = arith.addf %272, %14 : vector<2x32xf32>
    %274 = arith.mulf %262, %273 : vector<2x32xf32>
    %275 = arith.addf %271, %274 : vector<2x32xf32>
    %276 = math.tanh %275 : vector<2x32xf32>
    %cst_79 = arith.constant 1.000000e+00 : f32
    %277 = vector.broadcast %cst_79 : f32 to vector<2x32xf32>
    %278 = arith.subf %277, %270 : vector<2x32xf32>
    %279 = arith.mulf %278, %276 : vector<2x32xf32>
    %280 = arith.mulf %270, %243 : vector<2x32xf32>
    %281 = arith.addf %279, %280 : vector<2x32xf32>
    %c0_80 = arith.constant 0 : index
    %282 = arith.index_cast %249 : i32 to index
    %c0_81 = arith.constant 0 : index
    %c0_82 = arith.constant 0 : index
    %283 = vector.load %arg6[%c0_80, %282, %c0_81, %c0_82] : memref<1x8x2x32xf32, #tpu.memory_space<vmem>>, vector<1x1x2x32xf32>
    %284 = vector.shape_cast %283 : vector<1x1x2x32xf32> to vector<2x32xf32>
    %285 = vector.shape_cast %281 : vector<2x32xf32> to vector<1x1x2x32xf32>
    tpu.vector_store %arg6[%c0_80, %282, %c0_81, %c0_82], %285 {strides = array<i32>} : memref<1x8x2x32xf32, #tpu.memory_space<vmem>>, vector<1x1x2x32xf32>,
    %c7_i32_83 = arith.constant 7 : i32
    %286 = arith.muli %18, %c7_i32_83 : i32
    %287 = arith.addi %16, %286 : i32
    %c2_i32_84 = arith.constant 2 : i32
    %288 = arith.muli %287, %c2_i32_84 : i32
    %289 = tpu.assume_multiple %288, 2 : i32
    %290 = arith.index_cast %289 : i32 to index
    %c0_85 = arith.constant 0 : index
    %291 = vector.load %arg7[%290, %c0_85] : memref<16x96xf32, #tpu.memory_space<vmem>>, vector<2x96xf32>
    %cst_86 = arith.constant dense<0.000000e+00> : vector<2x96xf32>
    %292 = tpu.matmul %281, %10, %cst_86 {dimension_numbers = #tpu.dot_dimension_numbers<[1], [0], [0], [1], [0, 0, 1, 1], [], []>} : vector<2x32xf32>, vector<32x96xf32>, vector<2x96xf32> -> vector<2x96xf32>
    %293 = vector.extract_strided_slice %291 {offsets = [0, 0], sizes = [2, 32], strides = [1, 1]} : vector<2x96xf32> to vector<2x32xf32>
    %294 = vector.extract_strided_slice %292 {offsets = [0, 0], sizes = [2, 32], strides = [1, 1]} : vector<2x96xf32> to vector<2x32xf32>
    %295 = arith.addf %293, %294 : vector<2x32xf32>
    %296 = arith.negf %295 : vector<2x32xf32>
    %297 = math.exp %296 : vector<2x32xf32>
    %cst_87 = arith.constant 1.000000e+00 : f32
    %298 = vector.broadcast %cst_87 : f32 to vector<2x32xf32>
    %299 = arith.addf %298, %297 : vector<2x32xf32>
    %300 = arith.divf %298, %299 : vector<2x32xf32>
    %301 = vector.extract_strided_slice %291 {offsets = [0, 32], sizes = [2, 32], strides = [1, 1]} : vector<2x96xf32> to vector<2x32xf32>
    %302 = vector.extract_strided_slice %292 {offsets = [0, 32], sizes = [2, 32], strides = [1, 1]} : vector<2x96xf32> to vector<2x32xf32>
    %303 = arith.addf %301, %302 : vector<2x32xf32>
    %304 = arith.negf %303 : vector<2x32xf32>
    %305 = math.exp %304 : vector<2x32xf32>
    %cst_88 = arith.constant 1.000000e+00 : f32
    %306 = vector.broadcast %cst_88 : f32 to vector<2x32xf32>
    %307 = arith.addf %306, %305 : vector<2x32xf32>
    %308 = arith.divf %306, %307 : vector<2x32xf32>
    %309 = vector.extract_strided_slice %291 {offsets = [0, 64], sizes = [2, 32], strides = [1, 1]} : vector<2x96xf32> to vector<2x32xf32>
    %310 = vector.extract_strided_slice %292 {offsets = [0, 64], sizes = [2, 32], strides = [1, 1]} : vector<2x96xf32> to vector<2x32xf32>
    %311 = arith.addf %310, %14 : vector<2x32xf32>
    %312 = arith.mulf %300, %311 : vector<2x32xf32>
    %313 = arith.addf %309, %312 : vector<2x32xf32>
    %314 = math.tanh %313 : vector<2x32xf32>
    %cst_89 = arith.constant 1.000000e+00 : f32
    %315 = vector.broadcast %cst_89 : f32 to vector<2x32xf32>
    %316 = arith.subf %315, %308 : vector<2x32xf32>
    %317 = arith.mulf %316, %314 : vector<2x32xf32>
    %318 = arith.mulf %308, %281 : vector<2x32xf32>
    %319 = arith.addf %317, %318 : vector<2x32xf32>
    %c0_90 = arith.constant 0 : index
    %320 = arith.index_cast %287 : i32 to index
    %c0_91 = arith.constant 0 : index
    %c0_92 = arith.constant 0 : index
    %321 = vector.load %arg6[%c0_90, %320, %c0_91, %c0_92] : memref<1x8x2x32xf32, #tpu.memory_space<vmem>>, vector<1x1x2x32xf32>
    %322 = vector.shape_cast %321 : vector<1x1x2x32xf32> to vector<2x32xf32>
    %323 = vector.shape_cast %319 : vector<2x32xf32> to vector<1x1x2x32xf32>
    tpu.vector_store %arg6[%c0_90, %320, %c0_91, %c0_92], %323 {strides = array<i32>} : memref<1x8x2x32xf32, #tpu.memory_space<vmem>>, vector<1x1x2x32xf32>,
    %c8_i32 = arith.constant 8 : i32
    return
  }
  func.func @transform_0(%arg0: i32) -> (i32, i32) {
    %c0_i32 = arith.constant 0 : i32
    %c0_i32_0 = arith.constant 0 : i32
    %c0_i32_1 = arith.constant 0 : i32
    return %c0_i32, %c0_i32_0 : i32, i32
  }
  func.func @transform_1(%arg0: i32) -> (i32, i32, i32) {
    %c0_i32 = arith.constant 0 : i32
    %c0_i32_0 = arith.constant 0 : i32
    %c0_i32_1 = arith.constant 0 : i32
    return %arg0, %c0_i32, %c0_i32_0 : i32, i32, i32
  }
  func.func @transform_2(%arg0: i32) -> (i32, i32, i32) {
    %c0_i32 = arith.constant 0 : i32
    %c0_i32_0 = arith.constant 0 : i32
    %c0_i32_1 = arith.constant 0 : i32
    return %arg0, %c0_i32, %c0_i32_0 : i32, i32, i32
  }
  func.func @transform_3(%arg0: i32) -> (i32, i32, i32) {
    %c0_i32 = arith.constant 0 : i32
    %c0_i32_0 = arith.constant 0 : i32
    %c0_i32_1 = arith.constant 0 : i32
    return %arg0, %c0_i32, %c0_i32_0 : i32, i32, i32
  }
  func.func @transform_4(%arg0: i32) -> (i32, i32, i32) {
    %c0_i32 = arith.constant 0 : i32
    %c0_i32_0 = arith.constant 0 : i32
    %c0_i32_1 = arith.constant 0 : i32
    return %arg0, %c0_i32, %c0_i32_0 : i32, i32, i32
  }
  func.func @transform_5(%arg0: i32) -> (i32, i32, i32, i32) {
    %c0_i32 = arith.constant 0 : i32
    %c0_i32_0 = arith.constant 0 : i32
    %c0_i32_1 = arith.constant 0 : i32
    %c0_i32_2 = arith.constant 0 : i32
    return %arg0, %c0_i32, %c0_i32_0, %c0_i32_1 : i32, i32, i32, i32
  }
}

</mosaic_0001>

<bundles_post_ra>
// kernel: bgru_forward.5
= control target key start
LH: loop header
LB: loop body
LE: loop exit
PB: predicated region body
PF: predicated region fallthrough
CT: control target
= control target key end

     0   :  { %v278_v3 = vmov 0.0|0.0   ;;  %vm279_vm0 = vmmov 0   ;;  %v280_v11 = vmov 0.0   ;;  %s347_s0 = inlined_call_operand.vmem [shape: f32[2,2,32], index: 0, kind: input, shape index: {}]   ;;  %s348_s1 = inlined_call_operand.vmem [shape: f32[2,32,4], index: 1, kind: input, shape index: {}]   ;;  %s349_s2 = inlined_call_operand.vmem [shape: f32[1,4], index: 2, kind: input, shape index: {}]   ;;  %s350_s3 = inlined_call_operand.hbm [shape: f32[2,4], index: 3, kind: output, shape index: {}]  }
   0x1   :  { %v199_v0 = vld [vmem:[%s348_s1 + $0x20] sm:$0xff]  ;;  %v200_v1 = vld [vmem:[%s348_s1 + $0x28] sm:$0xff]  ;;  %238 = vmatprep.subr.bf16.mxu0 %v278_v3  ;;  %244 = vmatprep.subr.bf16.mxu1 %v278_v3  ;;  %v201_v6 = vld [vmem:[%s348_s1 + $0x30] sm:$0xff] }
   0x2   :  { %v16_v2 = vld [vmem:[%s348_s1] sm:$0xff]  ;;  %v239_v4 = vpack.c.bf16 %v200_v1, %v199_v0  ;;  %v17_v5 = vld [vmem:[%s348_s1 + $0x8] sm:$0xff]  ;;  %v202_v7 = vld [vmem:[%s348_s1 + $0x38] sm:$0xff]  ;;  %224 = vmatprep.mubr.msk.f32.mxu0 %vm279_vm0, %v280_v11  ;;  %235 = vmatprep.mubr.msk.f32.mxu1 %vm279_vm0, %v280_v11 }
   0x3   :  { %v245_v8 = vpack.c.bf16 %v17_v5, %v16_v2  ;;  %v18_v9 = vld [vmem:[%s348_s1 + $0x10] sm:$0xff]  ;;  %v19_v10 = vld [vmem:[%s348_s1 + $0x18] sm:$0xff]  ;;  %v242_v12 = vpack.c.bf16 %v202_v7, %v201_v6 }
   0x4   :  { %240 = vmatpush3.bf16.msra.mxu0 %v239_v4 }
   0x5   :  { %8 = vsyncpa [#allocation3], 0  ;;  %246 = vmatpush3.bf16.msra.mxu1 %v245_v8  ;;  %241 = vmatprep.subr.bf16.mxu0 %v278_v3  ;;  %v248_v13 = vpack.c.bf16 %v19_v10, %v18_v9  ;;  %v198_v14 = vld [vmem:[%s347_s0 + $0x2] sm:$0x3]  ;;  %vm27_vm1 = vcmask 261120   ;;  %s281_s6 = smov [#allocation2]  }
   0x6   :  { %247 = vmatprep.subr.bf16.mxu1 %v278_v3  ;;  %v15_v15 = vld [vmem:[%s347_s0] sm:$0x3]  ;;  %s190_s7 = sshll.u32 %s281_s6, 4  ;;  %vm182_vm2 = vcmask 25600   ;;  %s191_s7 = int_to_ptr.vmem [resolvable:$true] %s190_s7 }
   0x7   :  { %v205_v18 = vld [vmem:[%s349_s2] ss:$0 sm:$0xff]  ;;  %s254_s8 = scalar_lea.vmem %s191_s7, 32  ;;  %p259_p1 = scmp.lt.s32.totalorder %s191_s7, %s191_s7 }
   0x8   :  { %243 = vmatpush3.bf16.msra.mxu0 %v242_v12  ;;  %p255_p0 = scmp.ne.s32.totalorder %s191_s7, %s254_s8  ;;  %p260_p2 = scmp.lt.s32.totalorder %s254_s8, %s254_s8 }
   0x9   :  { %249 = vmatpush3.bf16.msra.mxu1 %v248_v13 }
   0xa   :  { %p261_p3 = por %p260_p2, %p259_p1 }
   0xb   :  { %225 = vmatmul.mubr.msk.f32.vlgmr.msra.gmra.mrb[0].mxu0 %vm27_vm1, %v198_v14 }
   0xc   :  { %236 = vmatmul.mubr.msk.f32.vlgmr.msra.gmra.mrb[0].mxu1 %vm27_vm1, %v15_v15  ;;  %p262_p4 = pnand %p261_p3, %p255_p0 }
  0xde   :  { %v97_v16 = vpop.f32.mrb[0].mxu0 }
  0xdf   :  { %v170_v17 = vpop.f32.mrb[0].mxu1  ;;  %v226_v19 = vpop.f32.mrb[1].mxu0 }
  0xe0   :  { %v171_v20 = vadd.f32 %v170_v17, %v97_v16  ;;  %v237_v21 = vpop.f32.mrb[1].mxu1 }
  0xe2   :  { %v181_v22 = vadd.f32 %v205_v18, %v171_v20 }
  0xe4   :  { %183 = vst.msk [vmem:[#allocation2] sm:$0x3] %vm182_vm2, %v181_v22 }
  0xe5   :  { %265 = shalt.err (!%p262_p4)
}
  0xe6   :  { %s266_s2 = scalar_lea.hbm %s350_s3, 32 }
  0xe7   :  { %p267_p5 = scmp.ne.s32.totalorder %s350_s3, %s266_s2  ;;  %p270_p6 = scmp.lt.u32.totalorder %s266_s2, %s350_s3 }
  0xe9   :  { %p272_p7 = pnand %p270_p6, %p267_p5 }
  0xeb   :  { %275 = shalt.err (!%p272_p7)
}
  0xec   :  { %193 = dma.vmem_to_hbm [thread:$0]  %s191_s7, 32, %s350_s3, [#allocation3]  }
  0xed   :  { %276 = dma.done.wait [#allocation3], 32  }
  0xee   :  { %277 = vsyncadd [#allocation3], 4294967264 }
  0xef   :  { %197 = vsyncpa [#allocation3], 1 }

// kernel: bgru_forward.3
= control target key start
LH: loop header
LB: loop body
LE: loop exit
PB: predicated region body
PF: predicated region fallthrough
CT: control target
= control target key end

     0   :  { %10 = vsyncpa [#allocation4], 0  ;;  %s2155_s0 = inlined_call_operand.vmem [shape: f32[16,16], index: 0, kind: input, shape index: {}]   ;;  %s2156_s1 = inlined_call_operand.vmem [shape: f32[2,16,96], index: 1, kind: input, shape index: {}]   ;;  %s2157_s2 = inlined_call_operand.hbm [shape: f32[2,32,96], index: 2, kind: input, shape index: {}]   ;;  %s2158_s3 = inlined_call_operand.vmem [shape: f32[2,1,96], index: 3, kind: input, shape index: {}]   ;;  %s2159_s4 = inlined_call_operand.vmem [shape: f32[2,1,32], index: 4, kind: input, shape index: {}]   ;;  %s2160_s5 = inlined_call_operand.vmem [shape: f32[2,8,2,32], index: 5, kind: output, shape index: {}]  }
   0x1   :  { %12 = vsyncpa [#allocation4 + $0x1], 0  ;;  %s1875_s18 = smov 0   ;;  %s1877_s19 = smov 0  }
   0x2   :  { %s1879_s20 = smov 0   ;;  %s1881_s21 = smov 0  }
   0x3 LB: > { %s1894_s22 = sadd.s32 4294967295, %s1835_s21   ;;  %s1897_s23 = sadd.s32 1, %s1835_s21   ;;  %s1835_s21 = sphi %s1881_s21, %s2170_s21   ;;  %s1831_s20 = sphi %s1879_s20, %s2169_s20   ;;  %s1827_s19 = sphi %s1877_s19, %s2168_s19   ;;  %s1823_s18 = sphi %s1875_s18, %s2167_s18  }
   0x4   : > { %s69_s24 = ssub.s32 %s1835_s21, %s1897_s23  ;;  %s72_s25 = sadd.s32 1, %s1831_s20 }
   0x5   : > { %p70_p0 = scmp.eq.s32.totalorder %s69_s24, 0  ;;  %p79_p1 = scmp.ne.s32.totalorder %s1831_s20, %s1827_s19 }
   0x6   : > { %p80_p2 = scmp.eq.s32.totalorder %s1835_s21, 0  ;;  %p85_p3 = scmp.ne.s32.totalorder %s1827_s19, %s1823_s18 }
   0x7   : > { %s1907_s26 = scalar_select %p70_p0, %s1831_s20, %s72_s25  }
   0x8   : > { %p81_p4 = por %p80_p2, %p79_p1  ;;  %p2161_p5 = scmp.eq.s32.totalorder %s1894_s22, 0 }
   0x9   : > { %p1683_p6 = scmp.lt.s32.totalorder %s1835_s21, 2  ;;  %s198_s28 = sand.u32 1, %s1831_s20  }
   0xa   : > { %p1913_p7 = por %p2161_p5, %p85_p3  ;;  %s1443_s29 = sshll.u32 %s198_s28, 5 }
   0xb   : > { %s1483_s30 = sshll.u32 %s1835_s21, 9  ;;  %s202_s9 = scalar_lea.vmem [#allocation3], %s1443_s29 }
   0xc   : > { %s1922_s8 = scalar_lea.hbm %s2157_s2, %s1483_s30  ;;  %s209_s10 = sshll.u32 %s202_s9, 4  ;;  %s1924_s10 = int_to_ptr.vmem [resolvable:$true] %s209_s10 }
   0xd   : > { %p1926_p8 = pnand %p1683_p6, %p81_p4  ;;  %s1931_s12 = scalar_lea.sflag [#allocation4], %s198_s28 }
   0xe   : > { %s1771_s13 = scalar_lea.hbm %s1922_s8, 512  ;;  %s1776_s16 = scalar_lea.hbm %s2157_s2, 1024 }
   0xf   : > { %p1772_p10 = scmp.ne.s32.totalorder %s1922_s8, %s1771_s13  ;;  %p1773_p11 = pneg %p1926_p8 }
  0x10   : > { %p1777_p0 = scmp.lt.u32.totalorder %s1922_s8, %s2157_s2  ;;  %p1778_p1 = scmp.lt.u32.totalorder %s1776_s16, %s1771_s13 }
  0x11   : > { %p1774_p12 = pnand %p1773_p11, %p1772_p10  ;;  %p1780_p3 = scmp.lt.u32.totalorder %s1771_s13, %s1922_s8 }
  0x12   : > { %p1779_p2 = por %p1778_p1, %p1777_p0 }
  0x13   : > { %p1775_p13 = pneg %p1774_p12 }
  0x14   : > { %p1781_p4 = por %p1780_p3, %p1779_p2 }
  0x16   : > { %p1782_p6 = pnand %p1781_p4, %p1775_p13 }
  0x18   : > { %1785 = shalt.err (!%p1782_p6)
}
  0x19   : > { %s1786_s24 = scalar_lea.vmem %s1924_s10, 512  ;;  %s1837_s25 = smov [#allocation3]  }
  0x1a   : > { %p1787_p10 = scmp.ne.s32.totalorder %s1924_s10, %s1786_s24  ;;  %s1791_s28 = sshll.u32 %s1837_s25, 4  ;;  %s1792_s28 = int_to_ptr.vmem [resolvable:$false] %s1791_s28 }
  0x1b   : > { %s1793_s29 = scalar_lea.vmem %s1792_s28, 1024  ;;  %p1794_p9 = scmp.lt.s32.totalorder %s1924_s10, %s1792_s28 }
  0x1c   : > { %p1789_p12 = pnand %p1787_p10, %p1773_p11  ;;  %p1795_p0 = scmp.lt.s32.totalorder %s1793_s29, %s1786_s24 }
  0x1e   : > { %p1790_p5 = pneg %p1789_p12  ;;  %p1796_p1 = por %p1795_p0, %p1794_p9 }
  0x20   : > { %p1797_p2 = pnand %p1796_p1, %p1790_p5 }
  0x22   : > { %1800 = shalt.err (!%p1797_p2)
}
  0x23   : > { %s1838_s30 = smov 128   ;;  %s1839_s6 = smov 8  }
  0x24   : > { %1682 = dma.hbm_to_vmem [thread:$0]  (!%p1926_p8), %s1922_s8, 512, %s1924_s10, %s1931_s12, %s1838_s30, %s1838_s30, %s1839_s6  }
  0x25   : > { %p229_p11 = scmp.lt.s32.totalorder %s1835_s21, 3  ;;  %p2164_p13 = scmp.ge.s32.totalorder %s1835_s21, 1 }
  0x27   : > { %p230_p3 = pnand %p2164_p13, %p229_p11 }
  0x28   : > { %s235_s7 = sand.u32 (!%p230_p3), 1, %s1827_s19  }
  0x29   : > { %233 = sbr.rel (%p230_p3) target bundleno = 5605 (0x15e5), region = 40  ;;  %s1447_s9 = sshll.u32 (!%p230_p3), %s235_s7, 5 }
  0x2a   : > { %s236_s13 = scalar_lea.sflag (!%p230_p3), [#allocation4], %s235_s7  ;;  %s239_s14 = scalar_lea.vmem (!%p230_p3), [#allocation3], %s1447_s9 }
  0x30   : > { %1818 = dma.done.wait (%p1913_p7), %s236_s13, 512  }
  0x31   : > { %1820 = vsyncadd (%p1913_p7), %s236_s13, 4294966784  ;;  %p277_p5 = scmp.lt.s32.totalorder %s1894_s22, 1  ;;  %v1840_v0 = vmov 0.0|0.0   ;;  %vm1841_vm0 = vmmov 0   ;;  %v1842_v1 = vmov 0.0   ;;  %vm304_vm1 = vcmask 130048  }
  0x32   : > { %1629 = vmatprep.subr.bf16.mxu1 %v1840_v0  ;;  %1545 = vmatprep.mubr.msk.f32.mxu1 %vm1841_vm0, %v1842_v1  ;;  %v389_v4 = vld [vmem:[%s239_s14] sm:$0xff]  ;;  %v390_v6 = vld [vmem:[%s239_s14 + $0x8] sm:$0xff]  ;;  %v293_v7 = vld [vmem:[%s2155_s0] sm:$0xff]  ;;  %s1843_s24 = smov 64   ;;  %vm386_vm2 = vcmask 785408   ;;  %p2165_p7 = scmp.eq.s32.totalorder %s1894_s22, 0 }
  0x33   : > { %s1972_s21 = scalar_select %p277_p5, %s1894_s22, 1  ;;  %v1987_v8 = vpack.c.bf16 %v390_v6, %v389_v4  ;;  %1534 = vmatprep.mubr.msk.f32.mxu0 %vm304_vm1, %v293_v7  ;;  %v391_v9 = vld [vmem:[%s239_s14 + $0x10] sm:$0xff]  ;;  %v392_v10 = vld [vmem:[%s239_s14 + $0x18] sm:$0xff]  ;;  %vm514_vm3 = vcmask 254976   ;;  %vm405_vm4 = vcmask 261120  }
  0x34   : > { %v294_v12 = vld [vmem:[%s2155_s0 + $0x8] sm:$0xff]  ;;  %v1995_v13 = vpack.c.bf16 %v392_v10, %v391_v9  ;;  %s2025_s7 = scalar_select %p2165_p7, 0, 7 }
  0x35   : > { %s1484_s8 = sshll.u32 %s1972_s21, 4  ;;  %s287_s16 = scalar_lea.vmem %s2159_s4, %s1972_s21  ;;  %1631 = vmatpush3.bf16.msra.mxu1 %v1987_v8 }
  0x36   : > { %s281_s11 = scalar_lea.vmem %s2156_s1, %s1484_s8  ;;  %v1455_v11 = vld [vmem:[%s287_s16] ss:$0 sm:$0xff]  ;;  %1632 = vmatprep.subr.bf16.mxu1 %v1840_v0  ;;  %s284_s6 = scalar_lea.vmem %s2158_s3, %s1972_s21 }
  0x37   : > { %v295_v2 = vld [vmem:[%s281_s11] sm:$0xff]  ;;  %v296_v3 = vld [vmem:[%s281_s11 + $0x8] sm:$0xff]  ;;  %486 = vrot.lane.b32.xlu0 %v1455_v11, %s1843_s24  ;;  %s1456_s9 = sshll.u32 %s2025_s7, 1  ;;  %s1844_s14 = smov 96  }
  0x38   : > { %v1625_v5 = vpack.c.bf16 %v296_v3, %v295_v2  ;;  %v1452_v14 = vld [vmem:[%s284_s6] ss:$0 sm:$0xff]  ;;  %s403_s13 = scalar_lea.vmem [#allocation2], %s1456_s9  ;;  %s2036_s11 = scalar_lea.vmem %s2160_s5, %s1484_s8 }
  0x39   : > { %1634 = vmatpush3.bf16.msra.mxu1 %v1995_v13  ;;  %s513_s12 = scalar_lea.vmem %s2036_s11, %s1456_s9  ;;  %p2166_p8 = pmov %p2165_p7 }
  0x3a   : > { %1626 = vmatprep.subr.bf16.mxu0 %v1625_v5  ;;  %1641 = vmatprep.subr.bf16.mxu1 %v1840_v0 }
  0x3b   : > { %1628 = vmatpush3.bf16.msra.mxu0 %v1625_v5  ;;  %s2051_s21 = scalar_select %p2166_p8, 1, 4294967295 }
  0x3c   : > { %1635 = vmatprep.subr.bf16.mxu0 %v1840_v0  ;;  %1546 = vmatmul.mubr.f32.vlgmr.msra.gmra.mrb[0].mxu1 %v1842_v1 }
  0x3d   : > { %1643 = vmatpush3.bf16.msra.mxu1 %v1987_v8  ;;  %1567 = vmatprep.mubr.msk.f32.mxu1 %vm1841_vm0, %v1842_v1  ;;  %s516_s8 = sadd.s32 %s2051_s21, %s2025_s7  ;;  %s1461_s17 = sshll.u32 %s2051_s21, 1 }
  0x3e   : > { %1535 = vmatmul.mubr.msk.f32.vlgmr.msra.gmra.mrb[0].mxu0 %vm304_vm1, %v294_v12  ;;  %1644 = vmatprep.subr.bf16.mxu1 %v1840_v0  ;;  %s1458_s15 = sshll.u32 %s516_s8, 1  ;;  %s626_s18 = sadd.s32 %s1461_s17, %s2025_s7 }
  0x3f   : > { %1637 = vmatpush3.bf16.msra.mxu0 %v1987_v8  ;;  %1556 = vmatprep.mubr.msk.f32.mxu0 %vm1841_vm0, %v1842_v1  ;;  %s518_s16 = scalar_lea.vmem [#allocation2], %s1458_s15  ;;  %s623_s22 = scalar_lea.vmem %s2036_s11, %s1458_s15 }
  0x40   : > { %1638 = vmatprep.subr.bf16.mxu0 %v1840_v0  ;;  %s1462_s25 = sshll.u32 %s626_s18, 1  ;;  %s735_s30 = smul.u32 3, %s2051_s21 }
  0x41   : > { %1646 = vmatpush3.bf16.msra.mxu1 %v1995_v13  ;;  %s628_s28 = scalar_lea.vmem [#allocation2], %s1462_s25  ;;  %s733_s29 = scalar_lea.vmem %s2036_s11, %s1462_s25 }
  0x42   : > { %1653 = vmatprep.subr.bf16.mxu1 %v1840_v0  ;;  %s736_s6 = sadd.s32 %s735_s30, %s2025_s7  ;;  %s1468_s10 = sshll.u32 %s2051_s21, 2 }
  0x43   : > { %1640 = vmatpush3.bf16.msra.mxu0 %v1995_v13  ;;  %s1465_s9 = sshll.u32 %s736_s6, 1 }
  0x44   : > { %1647 = vmatprep.subr.bf16.mxu0 %v1840_v0  ;;  %s843_s27 = scalar_lea.vmem %s2036_s11, %s1465_s9 }
  0xa9   : > { %v2019_v19 = vpop.permute.xlu0 %486 }
 0x10f   : > { %v475_v20 = vpop.f32.mrb[0].mxu1 }
 0x110   : > { %v489_v21 = vadd.f32 %v2019_v19, %v475_v20  ;;  %v1547_v22 = vpop.f32.mrb[1].mxu1 }
 0x111   : > { %v1536_v15 = vpop.f32.mrb[0].mxu0 }
 0x112   : > { %v383_v16 = vadd.f32 %v1536_v15, %v1452_v14  ;;  %v377_v17 = vpop.f32.mrb[1].mxu0  ;;  %491 = vrot.lane.b32.xlu0 %v489_v21, %s1843_s24 }
 0x113   : > { %v378_v18 = vadd.f32 %v1452_v14, %v377_v17 }
 0x114   : > { %388 = vst.msk [vmem:[#allocation2 + $0x8] sm:$0xff] %vm386_vm2, %v383_v16 }
 0x115   : > { %387 = vst.msk [vmem:[#allocation2] sm:$0xff] %vm386_vm2, %v378_v18 }
 0x11c   : > { %v404_v23 = vld [vmem:[%s403_s13] sm:$0x3]  ;;  %s738_s13 = scalar_lea.vmem [#allocation2], %s1465_s9 }
 0x11d   : > { %v479_v24 = vadd.f32 %v475_v20, %v404_v23  ;;  %v519_v43 = vld [vmem:[%s518_s16] sm:$0x3] }
 0x11e   : > { %v629_v63 = vld [vmem:[%s628_s28] sm:$0x3] }
 0x11f   : > { %v1457_v25 = vmul.f32 -1.442695, %v479_v24  ;;  %v739_v24 = vld [vmem:[%s738_s13] sm:$0x3] }
 0x121   : > { %1723 = vpow2.f32 %v1457_v25 }
 0x12b   : > { %v1724_v26 = vpop.eup %1723 }
 0x12c   : > { %v483_v27 = vadd.f32 1.0, %v1724_v26 }
 0x12e   : > { %1725 = vrcp.f32 %v483_v27 }
 0x138   : > { %v1726_v28 = vpop.eup %1725 }
 0x139   : > { %v501_v34 = vsub.f32 1.0, %v1726_v28  ;;  %v507_v36 = vmul.f32 0.0, %v1726_v28 }
 0x184   : > { %v492_v29 = vpop.permute.xlu0 %491 }
 0x185   : > { %v494_v30 = vmul.f32 %v1726_v28, %v492_v29 }
 0x187   : > { %496 = vrot.lane.b32.xlu1 %v494_v30, %s1843_s24 }
 0x1f9   : > { %v497_v31 = vpop.permute.xlu1 %496 }
 0x1fa   : > { %v499_v32 = vadd.f32 %v497_v31, %v404_v23 }
 0x1fc   : > { %1727 = vtanh.f32 %v499_v32 }
 0x206   : > { %v1728_v33 = vpop.eup %1727 }
 0x207   : > { %503 = vrot.lane.b32.xlu1 %v1728_v33, %s1844_s14 }
 0x279   : > { %v504_v35 = vpop.permute.xlu1 %503 }
 0x27a   : > { %v506_v37 = vmul.f32 %v504_v35, %v501_v34 }
 0x27c   : > { %v508_v38 = vadd.f32 %v507_v36, %v506_v37 }
 0x27e   : > { %510 = vrot.lane.b32.xlu0 %v508_v38, %s1844_s14 }
 0x2f0   : > { %v511_v39 = vpop.permute.xlu0 %510 }
 0x2f1   : > { %515 = vst.msk [vmem:[%s513_s12] sm:$0x3] %vm514_vm3, %v511_v39  ;;  %1557 = vmatmul.mubr.msk.f32.vlgmr.msra.gmra.mrb[2].mxu0 %vm405_vm4, %v511_v39  ;;  %s846_s12 = sadd.s32 %s1468_s10, %s2025_s7 }
 0x2f2   : > { %1649 = vmatpush3.bf16.msra.mxu0 %v1987_v8  ;;  %1578 = vmatprep.mubr.msk.f32.mxu0 %vm1841_vm0, %v1842_v1  ;;  %s1469_s8 = sshll.u32 %s846_s12, 1 }
 0x2f3   : > { %1650 = vmatprep.subr.bf16.mxu0 %v1840_v0  ;;  %s848_s15 = scalar_lea.vmem [#allocation2], %s1469_s8  ;;  %s953_s16 = scalar_lea.vmem %s2036_s11, %s1469_s8 }
 0x2f6   : > { %1652 = vmatpush3.bf16.msra.mxu0 %v1995_v13 }
 0x2f7   : > { %1659 = vmatprep.subr.bf16.mxu0 %v1840_v0 }
 0x3c4   : > { %v588_v40 = vpop.f32.mrb[2].mxu0 }
 0x3c5   : > { %v599_v41 = vadd.f32 %v588_v40, %v2019_v19  ;;  %v1558_v42 = vpop.f32.mrb[3].mxu0  ;;  %v592_v44 = vadd.f32 %v588_v40, %v519_v43 }
 0x3c7   : > { %601 = vrot.lane.b32.xlu1 %v599_v41, %s1843_s24  ;;  %v1460_v45 = vmul.f32 -1.442695, %v592_v44  ;;  %v849_v44 = vld [vmem:[%s848_s15] sm:$0x3] }
 0x3c9   : > { %1729 = vpow2.f32 %v1460_v45 }
 0x3d3   : > { %v1730_v46 = vpop.eup %1729 }
 0x3d4   : > { %v596_v47 = vadd.f32 1.0, %v1730_v46 }
 0x3d6   : > { %1731 = vrcp.f32 %v596_v47 }
 0x3e0   : > { %v1732_v48 = vpop.eup %1731 }
 0x3e1   : > { %v611_v54 = vsub.f32 1.0, %v1732_v48  ;;  %v617_v56 = vmul.f32 %v1732_v48, %v508_v38 }
 0x439   : > { %v602_v49 = vpop.permute.xlu1 %601 }
 0x43a   : > { %v604_v50 = vmul.f32 %v1732_v48, %v602_v49 }
 0x43c   : > { %606 = vrot.lane.b32.xlu0 %v604_v50, %s1843_s24 }
 0x4ae   : > { %v607_v51 = vpop.permute.xlu0 %606 }
 0x4af   : > { %v609_v52 = vadd.f32 %v607_v51, %v519_v43 }
 0x4b1   : > { %1733 = vtanh.f32 %v609_v52 }
 0x4bb   : > { %v1734_v53 = vpop.eup %1733 }
 0x4bc   : > { %613 = vrot.lane.b32.xlu1 %v1734_v53, %s1844_s14 }
 0x52e   : > { %v614_v55 = vpop.permute.xlu1 %613 }
 0x52f   : > { %v616_v57 = vmul.f32 %v614_v55, %v611_v54 }
 0x531   : > { %v618_v58 = vadd.f32 %v617_v56, %v616_v57 }
 0x533   : > { %620 = vrot.lane.b32.xlu0 %v618_v58, %s1844_s14 }
 0x5a5   : > { %v621_v59 = vpop.permute.xlu0 %620 }
 0x5a6   : > { %624 = vst.msk [vmem:[%s623_s22] sm:$0x3] %vm514_vm3, %v621_v59  ;;  %1568 = vmatmul.mubr.msk.f32.vlgmr.msra.gmra.mrb[2].mxu1 %vm405_vm4, %v621_v59  ;;  %s955_s22 = smul.u32 5, %s2051_s21 }
 0x5a7   : > { %1655 = vmatpush3.bf16.msra.mxu1 %v1987_v8  ;;  %1589 = vmatprep.mubr.msk.f32.mxu1 %vm1841_vm0, %v1842_v1 }
 0x5a8   : > { %1656 = vmatprep.subr.bf16.mxu1 %v1840_v0  ;;  %s956_s17 = sadd.s32 %s955_s22, %s2025_s7 }
 0x5a9   : > { %s1472_s18 = sshll.u32 %s956_s17, 1 }
 0x5aa   : > { %s958_s25 = scalar_lea.vmem [#allocation2], %s1472_s18  ;;  %s1063_s28 = scalar_lea.vmem %s2036_s11, %s1472_s18 }
 0x5ab   : > { %1658 = vmatpush3.bf16.msra.mxu1 %v1995_v13 }
 0x5ac   : > { %1665 = vmatprep.subr.bf16.mxu1 %v1840_v0 }
 0x679   : > { %v698_v60 = vpop.f32.mrb[2].mxu1 }
 0x67a   : > { %v709_v61 = vadd.f32 %v698_v60, %v2019_v19  ;;  %v1569_v62 = vpop.f32.mrb[3].mxu1  ;;  %v702_v2 = vadd.f32 %v698_v60, %v629_v63 }
 0x67c   : > { %711 = vrot.lane.b32.xlu1 %v709_v61, %s1843_s24  ;;  %v1464_v3 = vmul.f32 -1.442695, %v702_v2  ;;  %v959_v2 = vld [vmem:[%s958_s25] sm:$0x3] }
 0x67e   : > { %1735 = vpow2.f32 %v1464_v3 }
 0x688   : > { %v1736_v4 = vpop.eup %1735 }
 0x689   : > { %v706_v5 = vadd.f32 1.0, %v1736_v4 }
 0x68b   : > { %1737 = vrcp.f32 %v706_v5 }
 0x695   : > { %v1738_v6 = vpop.eup %1737 }
 0x696   : > { %v721_v14 = vsub.f32 1.0, %v1738_v6  ;;  %v727_v16 = vmul.f32 %v1738_v6, %v618_v58 }
 0x6ee   : > { %v712_v7 = vpop.permute.xlu1 %711 }
 0x6ef   : > { %v714_v9 = vmul.f32 %v1738_v6, %v712_v7 }
 0x6f1   : > { %716 = vrot.lane.b32.xlu0 %v714_v9, %s1843_s24 }
 0x763   : > { %v717_v10 = vpop.permute.xlu0 %716 }
 0x764   : > { %v719_v11 = vadd.f32 %v717_v10, %v629_v63 }
 0x766   : > { %1739 = vtanh.f32 %v719_v11 }
 0x770   : > { %v1740_v12 = vpop.eup %1739 }
 0x771   : > { %723 = vrot.lane.b32.xlu1 %v1740_v12, %s1844_s14 }
 0x7e3   : > { %v724_v15 = vpop.permute.xlu1 %723 }
 0x7e4   : > { %v726_v17 = vmul.f32 %v724_v15, %v721_v14 }
 0x7e6   : > { %v728_v18 = vadd.f32 %v727_v16, %v726_v17 }
 0x7e8   : > { %730 = vrot.lane.b32.xlu0 %v728_v18, %s1844_s14 }
 0x85a   : > { %v731_v20 = vpop.permute.xlu0 %730 }
 0x85b   : > { %734 = vst.msk [vmem:[%s733_s29] sm:$0x3] %vm514_vm3, %v731_v20  ;;  %1579 = vmatmul.mubr.msk.f32.vlgmr.msra.gmra.mrb[4].mxu0 %vm405_vm4, %v731_v20  ;;  %s1065_s29 = smul.u32 6, %s2051_s21 }
 0x85c   : > { %1661 = vmatpush3.bf16.msra.mxu0 %v1987_v8  ;;  %1600 = vmatprep.mubr.msk.f32.mxu0 %vm1841_vm0, %v1842_v1 }
 0x85d   : > { %1662 = vmatprep.subr.bf16.mxu0 %v1840_v0  ;;  %s1066_s30 = sadd.s32 %s1065_s29, %s2025_s7 }
 0x85e   : > { %s1475_s6 = sshll.u32 %s1066_s30, 1 }
 0x85f   : > { %s1068_s9 = scalar_lea.vmem [#allocation2], %s1475_s6  ;;  %s1173_s13 = scalar_lea.vmem %s2036_s11, %s1475_s6 }
 0x860   : > { %1664 = vmatpush3.bf16.msra.mxu0 %v1995_v13 }
 0x861   : > { %1671 = vmatprep.subr.bf16.mxu0 %v1840_v0 }
 0x92e   : > { %v808_v21 = vpop.f32.mrb[4].mxu0 }
 0x92f   : > { %v819_v22 = vadd.f32 %v808_v21, %v2019_v19  ;;  %v1580_v23 = vpop.f32.mrb[5].mxu0  ;;  %v812_v25 = vadd.f32 %v808_v21, %v739_v24  ;;  %v1069_v21 = vld [vmem:[%s1068_s9] sm:$0x3] }
 0x931   : > { %821 = vrot.lane.b32.xlu1 %v819_v22, %s1843_s24  ;;  %v1467_v26 = vmul.f32 -1.442695, %v812_v25 }
 0x933   : > { %1741 = vpow2.f32 %v1467_v26 }
 0x93d   : > { %v1742_v27 = vpop.eup %1741 }
 0x93e   : > { %v816_v28 = vadd.f32 1.0, %v1742_v27 }
 0x940   : > { %1743 = vrcp.f32 %v816_v28 }
 0x94a   : > { %v1744_v29 = vpop.eup %1743 }
 0x94b   : > { %v831_v35 = vsub.f32 1.0, %v1744_v29  ;;  %v837_v37 = vmul.f32 %v1744_v29, %v728_v18 }
 0x9a3   : > { %v822_v30 = vpop.permute.xlu1 %821 }
 0x9a4   : > { %v824_v31 = vmul.f32 %v1744_v29, %v822_v30 }
 0x9a6   : > { %826 = vrot.lane.b32.xlu0 %v824_v31, %s1843_s24 }
 0xa18   : > { %v827_v32 = vpop.permute.xlu0 %826 }
 0xa19   : > { %v829_v33 = vadd.f32 %v827_v32, %v739_v24 }
 0xa1b   : > { %1745 = vtanh.f32 %v829_v33 }
 0xa25   : > { %v1746_v34 = vpop.eup %1745 }
 0xa26   : > { %833 = vrot.lane.b32.xlu1 %v1746_v34, %s1844_s14 }
 0xa98   : > { %v834_v36 = vpop.permute.xlu1 %833 }
 0xa99   : > { %v836_v38 = vmul.f32 %v834_v36, %v831_v35 }
 0xa9b   : > { %v838_v39 = vadd.f32 %v837_v37, %v836_v38 }
 0xa9d   : > { %840 = vrot.lane.b32.xlu0 %v838_v39, %s1844_s14 }
 0xb0f   : > { %v841_v40 = vpop.permute.xlu0 %840 }
 0xb10   : > { %844 = vst.msk [vmem:[%s843_s27] sm:$0x3] %vm514_vm3, %v841_v40  ;;  %1590 = vmatmul.mubr.msk.f32.vlgmr.msra.gmra.mrb[4].mxu1 %vm405_vm4, %v841_v40  ;;  %s1175_s27 = smul.u32 7, %s2051_s21 }
 0xb11   : > { %1667 = vmatpush3.bf16.msra.mxu1 %v1987_v8  ;;  %1611 = vmatprep.mubr.msk.f32.mxu1 %vm1841_vm0, %v1842_v1 }
 0xb12   : > { %1668 = vmatprep.subr.bf16.mxu1 %v1840_v0  ;;  %s1176_s10 = sadd.s32 %s1175_s27, %s2025_s7 }
 0xb13   : > { %s1478_s12 = sshll.u32 %s1176_s10, 1 }
 0xb14   : > { %s1178_s8 = scalar_lea.vmem [#allocation2], %s1478_s12  ;;  %s1283_s7 = scalar_lea.vmem %s2036_s11, %s1478_s12 }
 0xb15   : > { %1670 = vmatpush3.bf16.msra.mxu1 %v1995_v13 }
 0xbe3   : > { %v918_v41 = vpop.f32.mrb[4].mxu1 }
 0xbe4   : > { %v929_v42 = vadd.f32 %v918_v41, %v2019_v19  ;;  %v1591_v43 = vpop.f32.mrb[5].mxu1  ;;  %v922_v45 = vadd.f32 %v918_v41, %v849_v44  ;;  %v1179_v41 = vld [vmem:[%s1178_s8] sm:$0x3] }
 0xbe6   : > { %931 = vrot.lane.b32.xlu1 %v929_v42, %s1843_s24  ;;  %v1471_v46 = vmul.f32 -1.442695, %v922_v45 }
 0xbe8   : > { %1747 = vpow2.f32 %v1471_v46 }
 0xbf2   : > { %v1748_v47 = vpop.eup %1747 }
 0xbf3   : > { %v926_v48 = vadd.f32 1.0, %v1748_v47 }
 0xbf5   : > { %1749 = vrcp.f32 %v926_v48 }
 0xbff   : > { %v1750_v49 = vpop.eup %1749 }
 0xc00   : > { %v941_v55 = vsub.f32 1.0, %v1750_v49  ;;  %v947_v57 = vmul.f32 %v1750_v49, %v838_v39 }
 0xc58   : > { %v932_v50 = vpop.permute.xlu1 %931 }
 0xc59   : > { %v934_v51 = vmul.f32 %v1750_v49, %v932_v50 }
 0xc5b   : > { %936 = vrot.lane.b32.xlu0 %v934_v51, %s1843_s24 }
 0xccd   : > { %v937_v52 = vpop.permute.xlu0 %936 }
 0xcce   : > { %v939_v53 = vadd.f32 %v937_v52, %v849_v44 }
 0xcd0   : > { %1751 = vtanh.f32 %v939_v53 }
 0xcda   : > { %v1752_v54 = vpop.eup %1751 }
 0xcdb   : > { %943 = vrot.lane.b32.xlu1 %v1752_v54, %s1844_s14 }
 0xd4d   : > { %v944_v56 = vpop.permute.xlu1 %943 }
 0xd4e   : > { %v946_v58 = vmul.f32 %v944_v56, %v941_v55 }
 0xd50   : > { %v948_v59 = vadd.f32 %v947_v57, %v946_v58 }
 0xd52   : > { %950 = vrot.lane.b32.xlu0 %v948_v59, %s1844_s14 }
 0xdc4   : > { %v951_v60 = vpop.permute.xlu0 %950 }
 0xdc5   : > { %954 = vst.msk [vmem:[%s953_s16] sm:$0x3] %vm514_vm3, %v951_v60  ;;  %1601 = vmatmul.mubr.msk.f32.vlgmr.msra.gmra.mrb[6].mxu0 %vm405_vm4, %v951_v60 }
 0xdc6   : > { %1673 = vmatpush3.bf16.msra.mxu0 %v1987_v8  ;;  %1622 = vmatprep.mubr.msk.f32.mxu0 %vm1841_vm0, %v1842_v1 }
 0xdc7   : > { %1674 = vmatprep.subr.bf16.mxu0 %v1840_v0 }
 0xdca   : > { %1676 = vmatpush3.bf16.msra.mxu0 %v1995_v13 }
 0xe98   : > { %v1028_v61 = vpop.f32.mrb[6].mxu0 }
 0xe99   : > { %v1039_v62 = vadd.f32 %v1028_v61, %v2019_v19  ;;  %v1602_v63 = vpop.f32.mrb[7].mxu0  ;;  %v1032_v3 = vadd.f32 %v1028_v61, %v959_v2 }
 0xe9b   : > { %1041 = vrot.lane.b32.xlu1 %v1039_v62, %s1843_s24  ;;  %v1474_v8 = vmul.f32 -1.442695, %v1032_v3 }
 0xe9d   : > { %1753 = vpow2.f32 %v1474_v8 }
 0xea7   : > { %v1754_v4 = vpop.eup %1753 }
 0xea8   : > { %v1036_v1 = vadd.f32 1.0, %v1754_v4 }
 0xeaa   : > { %1755 = vrcp.f32 %v1036_v1 }
 0xeb4   : > { %v1756_v0 = vpop.eup %1755 }
 0xeb5   : > { %v1051_v10 = vsub.f32 1.0, %v1756_v0  ;;  %v1057_v12 = vmul.f32 %v1756_v0, %v948_v59 }
 0xf0d   : > { %v1042_v13 = vpop.permute.xlu1 %1041 }
 0xf0e   : > { %v1044_v5 = vmul.f32 %v1756_v0, %v1042_v13 }
 0xf10   : > { %1046 = vrot.lane.b32.xlu0 %v1044_v5, %s1843_s24 }
 0xf82   : > { %v1047_v6 = vpop.permute.xlu0 %1046 }
 0xf83   : > { %v1049_v7 = vadd.f32 %v1047_v6, %v959_v2 }
 0xf85   : > { %1757 = vtanh.f32 %v1049_v7 }
 0xf8f   : > { %v1758_v9 = vpop.eup %1757 }
 0xf90   : > { %1053 = vrot.lane.b32.xlu1 %v1758_v9, %s1844_s14 }
0x1002   : > { %v1054_v11 = vpop.permute.xlu1 %1053 }
0x1003   : > { %v1056_v14 = vmul.f32 %v1054_v11, %v1051_v10 }
0x1005   : > { %v1058_v15 = vadd.f32 %v1057_v12, %v1056_v14 }
0x1007   : > { %1060 = vrot.lane.b32.xlu0 %v1058_v15, %s1844_s14 }
0x1079   : > { %v1061_v16 = vpop.permute.xlu0 %1060 }
0x107a   : > { %1064 = vst.msk [vmem:[%s1063_s28] sm:$0x3] %vm514_vm3, %v1061_v16  ;;  %1612 = vmatmul.mubr.msk.f32.vlgmr.msra.gmra.mrb[6].mxu1 %vm405_vm4, %v1061_v16 }
0x114d   : > { %v1138_v17 = vpop.f32.mrb[6].mxu1 }
0x114e   : > { %v1149_v18 = vadd.f32 %v1138_v17, %v2019_v19  ;;  %v1613_v20 = vpop.f32.mrb[7].mxu1  ;;  %v1142_v22 = vadd.f32 %v1138_v17, %v1069_v21 }
0x1150   : > { %1151 = vrot.lane.b32.xlu1 %v1149_v18, %s1843_s24  ;;  %v1477_v23 = vmul.f32 -1.442695, %v1142_v22 }
0x1152   : > { %1759 = vpow2.f32 %v1477_v23 }
0x115c   : > { %v1760_v24 = vpop.eup %1759 }
0x115d   : > { %v1146_v25 = vadd.f32 1.0, %v1760_v24 }
0x115f   : > { %1761 = vrcp.f32 %v1146_v25 }
0x1169   : > { %v1762_v26 = vpop.eup %1761 }
0x116a   : > { %v1161_v32 = vsub.f32 1.0, %v1762_v26  ;;  %v1167_v34 = vmul.f32 %v1762_v26, %v1058_v15 }
0x11c2   : > { %v1152_v27 = vpop.permute.xlu1 %1151 }
0x11c3   : > { %v1154_v28 = vmul.f32 %v1762_v26, %v1152_v27 }
0x11c5   : > { %1156 = vrot.lane.b32.xlu0 %v1154_v28, %s1843_s24 }
0x1237   : > { %v1157_v29 = vpop.permute.xlu0 %1156 }
0x1238   : > { %v1159_v30 = vadd.f32 %v1157_v29, %v1069_v21 }
0x123a   : > { %1763 = vtanh.f32 %v1159_v30 }
0x1244   : > { %v1764_v31 = vpop.eup %1763 }
0x1245   : > { %1163 = vrot.lane.b32.xlu1 %v1764_v31, %s1844_s14 }
0x12b7   : > { %v1164_v33 = vpop.permute.xlu1 %1163 }
0x12b8   : > { %v1166_v35 = vmul.f32 %v1164_v33, %v1161_v32 }
0x12ba   : > { %v1168_v36 = vadd.f32 %v1167_v34, %v1166_v35 }
0x12bc   : > { %1170 = vrot.lane.b32.xlu0 %v1168_v36, %s1844_s14 }
0x132e   : > { %v1171_v37 = vpop.permute.xlu0 %1170 }
0x132f   : > { %1174 = vst.msk [vmem:[%s1173_s13] sm:$0x3] %vm514_vm3, %v1171_v37  ;;  %1623 = vmatmul.mubr.msk.f32.vlgmr.msra.gmra.mrb[8].mxu0 %vm405_vm4, %v1171_v37 }
0x1402   : > { %v1248_v38 = vpop.f32.mrb[8].mxu0 }
0x1403   : > { %v1259_v39 = vadd.f32 %v1248_v38, %v2019_v19  ;;  %v1624_v40 = vpop.f32.mrb[9].mxu0  ;;  %v1252_v42 = vadd.f32 %v1248_v38, %v1179_v41 }
0x1405   : > { %1261 = vrot.lane.b32.xlu1 %v1259_v39, %s1843_s24  ;;  %v1480_v43 = vmul.f32 -1.442695, %v1252_v42 }
0x1407   : > { %1765 = vpow2.f32 %v1480_v43 }
0x1411   : > { %v1766_v44 = vpop.eup %1765 }
0x1412   : > { %v1256_v45 = vadd.f32 1.0, %v1766_v44 }
0x1414   : > { %1767 = vrcp.f32 %v1256_v45 }
0x141e   : > { %v1768_v46 = vpop.eup %1767 }
0x141f   : > { %v1271_v51 = vsub.f32 1.0, %v1768_v46  ;;  %v1277_v53 = vmul.f32 %v1768_v46, %v1168_v36 }
0x1477   : > { %v1262_v47 = vpop.permute.xlu1 %1261 }
0x1478   : > { %v1264_v48 = vmul.f32 %v1768_v46, %v1262_v47 }
0x147a   : > { %1266 = vrot.lane.b32.xlu0 %v1264_v48, %s1843_s24 }
0x14ec   : > { %v1267_v19 = vpop.permute.xlu0 %1266 }
0x14ed   : > { %v1269_v49 = vadd.f32 %v1267_v19, %v1179_v41 }
0x14ef   : > { %1769 = vtanh.f32 %v1269_v49 }
0x14f9   : > { %v1770_v50 = vpop.eup %1769 }
0x14fa   : > { %1273 = vrot.lane.b32.xlu1 %v1770_v50, %s1844_s14 }
0x156c   : > { %v1274_v52 = vpop.permute.xlu1 %1273 }
0x156d   : > { %v1276_v54 = vmul.f32 %v1274_v52, %v1271_v51 }
0x156f   : > { %v1278_v55 = vadd.f32 %v1277_v53, %v1276_v54 }
0x1571   : > { %1280 = vrot.lane.b32.xlu0 %v1278_v55, %s1844_s14 }
0x15e3   : > { %v1281_v56 = vpop.permute.xlu0 %1280 }
0x15e4   : > { %1284 = vst.msk [vmem:[%s1283_s7] sm:$0x3] %vm514_vm3, %v1281_v56 }
0x15e5 PF: > { %p15_p9 = scmp.ge.s32.totalorder %s1897_s23, 4   ;;  %s2167_s18 = smov %s1827_s19 }
0x15e6   : > { %s2168_s19 = smov %s1831_s20  ;;  %s2169_s20 = smov %s1907_s26 }
0x15e7   : > { %s2170_s21 = smov %s1897_s23  ;;  %17 = sbr.rel (!%p15_p9) target bundleno = 3 (0x3), region = 105 }
0x15ee   :  { %1306 = vsyncpa [#allocation4], 1 }
0x15ef   :  { %1308 = vsyncpa [#allocation4 + $0x1], 1 }

// kernel: bgru_forward.4
= control target key start
LH: loop header
LB: loop body
LE: loop exit
PB: predicated region body
PF: predicated region fallthrough
CT: control target
= control target key end

     0   :  { %s1784_s18 = smov 0   ;;  %s1974_s0 = inlined_call_operand.vmem [shape: f32[16,64], index: 0, kind: input, shape index: {}]   ;;  %s1975_s1 = inlined_call_operand.vmem [shape: f32[2,64,96], index: 1, kind: input, shape index: {}]   ;;  %s1976_s2 = inlined_call_operand.vmem [shape: f32[2,32,96], index: 2, kind: input, shape index: {}]   ;;  %s1977_s3 = inlined_call_operand.vmem [shape: f32[2,1,96], index: 3, kind: input, shape index: {}]   ;;  %s1978_s4 = inlined_call_operand.vmem [shape: f32[2,1,32], index: 4, kind: input, shape index: {}]   ;;  %s1979_s5 = inlined_call_operand.vmem [shape: f32[2,8,2,32], index: 5, kind: output, shape index: {}]  }
   0x1 LB: > { %s1790_s19 = sadd.s32 4294967295, %s1747_s18   ;;  %p1418_p0 = scmp.ge.s32.totalorder %s1747_s18, 1  ;;  %s1747_s18 = sphi %s1784_s18, %s15_s18  }
   0x2   : > { %p213_p1 = scmp.lt.s32.totalorder %s1747_s18, 3 }
   0x4   : > { %p214_p2 = pnand %p1418_p0, %p213_p1 }
   0x5   : > { %p252_p3 = scmp.lt.s32.totalorder (!%p214_p2), %s1790_s19, 1  ;;  %v273_v0 = vld [vmem:[%s1974_s0] sm:$0xff] (!%p214_p2)  ;;  %vm290_vm0 = vcmask (!%p214_p2), 523264   ;;  %v1749_v1 = vmov (!%p214_p2), 0.0|0.0   ;;  %vm1750_vm1 = vmmov (!%p214_p2), 0   ;;  %v1751_v2 = vmov (!%p214_p2), 0.0  }
   0x6   : > { %217 = sbr.rel (%p214_p2) target bundleno = 5573 (0x15c5), region = 40  ;;  %1632 = vmatprep.subr.bf16.mxu1 (!%p214_p2), %v1749_v1  ;;  %1536 = vmatprep.mubr.msk.f32.mxu1 (!%p214_p2), %vm1750_vm1, %v1751_v2  ;;  %s1752_s9 = smov (!%p214_p2), 64   ;;  %v274_v22 = vld [vmem:[%s1974_s0 + $0x8] sm:$0xff] (!%p214_p2)  ;;  %vm372_vm2 = vcmask (!%p214_p2), 785408   ;;  %vm500_vm3 = vcmask (!%p214_p2), 254976   ;;  %vm391_vm4 = vcmask (!%p214_p2), 261120  }
   0x7   : > { %1525 = vmatprep.mubr.msk.f32.mxu0 (!%p214_p2), %vm290_vm0, %v273_v0  ;;  %p385_p4 = scmp.eq.s32.totalorder (!%p214_p2), %s1790_s19, 0  ;;  %s1753_s20 = smov (!%p214_p2), 96  }
   0xd   : > { %s1802_s22 = scalar_select %p252_p3, %s1790_s19, 1 }
   0xe   : > { %s1855_s15 = scalar_select %p385_p4, 0, 7 }
   0xf   : > { %s1456_s23 = sshll.u32 %s1802_s22, 6  ;;  %s1457_s24 = sshll.u32 %s1802_s22, 5 }
  0x10   : > { %s256_s27 = scalar_lea.vmem %s1975_s1, %s1456_s23  ;;  %s261_s30 = scalar_lea.vmem %s1976_s2, %s1457_s24 }
  0x11   : > { %v275_v3 = vld [vmem:[%s256_s27] sm:$0xff]  ;;  %v276_v4 = vld [vmem:[%s256_s27 + $0x8] sm:$0xff]  ;;  %v277_v8 = vld [vmem:[%s256_s27 + $0x10] sm:$0xff]  ;;  %s267_s8 = scalar_lea.vmem %s1978_s4, %s1802_s22  ;;  %s264_s14 = scalar_lea.vmem %s1977_s3, %s1802_s22 }
  0x12   : > { %v375_v5 = vld [vmem:[%s261_s30] sm:$0xff]  ;;  %v1616_v6 = vpack.c.bf16 %v276_v4, %v275_v3  ;;  %v376_v7 = vld [vmem:[%s261_s30 + $0x8] sm:$0xff]  ;;  %v278_v9 = vld [vmem:[%s256_s27 + $0x18] sm:$0xff]  ;;  %s1429_s16 = sshll.u32 %s1855_s15, 1  ;;  %s1458_s21 = sshll.u32 %s1802_s22, 4 }
  0x13   : > { %v1817_v10 = vpack.c.bf16 %v376_v7, %v375_v5  ;;  %v1620_v11 = vpack.c.bf16 %v278_v9, %v277_v8  ;;  %v377_v12 = vld [vmem:[%s261_s30 + $0x10] sm:$0xff]  ;;  %v378_v13 = vld [vmem:[%s261_s30 + $0x18] sm:$0xff]  ;;  %v279_v14 = vld [vmem:[%s256_s27 + $0x20] sm:$0xff]  ;;  %s389_s17 = scalar_lea.vmem [#allocation2], %s1429_s16  ;;  %s1865_s25 = scalar_lea.vmem %s1979_s5, %s1458_s21 }
  0x14   : > { %1617 = vmatprep.subr.bf16.mxu0 %v1616_v6  ;;  %v280_v15 = vld [vmem:[%s256_s27 + $0x28] sm:$0xff]  ;;  %v1820_v16 = vpack.c.bf16 %v378_v13, %v377_v12  ;;  %v1428_v17 = vld [vmem:[%s267_s8] ss:$0 sm:$0xff]  ;;  %v281_v19 = vld [vmem:[%s256_s27 + $0x30] sm:$0xff]  ;;  %s499_s26 = scalar_lea.vmem %s1865_s25, %s1429_s16 }
  0x15   : > { %1634 = vmatpush3.bf16.msra.mxu1 %v1817_v10  ;;  %1619 = vmatpush3.bf16.msra.mxu0 %v1616_v6  ;;  %v1624_v18 = vpack.c.bf16 %v280_v15, %v279_v14  ;;  %v282_v20 = vld [vmem:[%s256_s27 + $0x38] sm:$0xff]  ;;  %v1425_v27 = vld [vmem:[%s264_s14] ss:$0 sm:$0xff]  ;;  %s1880_s22 = scalar_select %p385_p4, 1, 4294967295 }
  0x16   : > { %1635 = vmatprep.subr.bf16.mxu1 %v1749_v1  ;;  %1621 = vmatprep.subr.bf16.mxu0 %v1620_v11  ;;  %v1628_v21 = vpack.c.bf16 %v282_v20, %v281_v19 }
  0x17   : > { %472 = vrot.lane.b32.xlu0 %v1428_v17, %s1752_s9  ;;  %s502_s27 = sadd.s32 %s1880_s22, %s1855_s15  ;;  %s1434_s30 = sshll.u32 %s1880_s22, 1 }
  0x18   : > { %s1431_s28 = sshll.u32 %s502_s27, 1  ;;  %s612_s6 = sadd.s32 %s1434_s30, %s1855_s15 }
  0x19   : > { %1637 = vmatpush3.bf16.msra.mxu1 %v1820_v16  ;;  %1623 = vmatpush3.bf16.msra.mxu0 %v1620_v11  ;;  %s504_s29 = scalar_lea.vmem [#allocation2], %s1431_s28  ;;  %s609_s19 = scalar_lea.vmem %s1865_s25, %s1431_s28 }
  0x1a   : > { %1625 = vmatprep.subr.bf16.mxu0 %v1624_v18  ;;  %1638 = vmatprep.subr.bf16.mxu1 %v1749_v1  ;;  %s1435_s7 = sshll.u32 %s612_s6, 1  ;;  %s721_s11 = smul.u32 3, %s1880_s22 }
  0x1b   : > { %s614_s8 = scalar_lea.vmem [#allocation2], %s1435_s7  ;;  %s719_s10 = scalar_lea.vmem %s1865_s25, %s1435_s7 }
  0x1c   : > { %1537 = vmatmul.mubr.f32.vlgmr.msra.gmra.mrb[0].mxu1 %v1751_v2  ;;  %s722_s12 = sadd.s32 %s721_s11, %s1855_s15  ;;  %s941_s27 = smul.u32 5, %s1880_s22 }
  0x1d   : > { %1627 = vmatpush3.bf16.msra.mxu0 %v1624_v18  ;;  %1640 = vmatpush3.bf16.msra.mxu1 %v1817_v10  ;;  %s1438_s13 = sshll.u32 %s722_s12, 1  ;;  %s1051_s6 = smul.u32 6, %s1880_s22 }
  0x1e   : > { %1629 = vmatprep.subr.bf16.mxu0 %v1628_v21  ;;  %1641 = vmatprep.subr.bf16.mxu1 %v1749_v1  ;;  %s724_s14 = scalar_lea.vmem [#allocation2], %s1438_s13  ;;  %s829_s16 = scalar_lea.vmem %s1865_s25, %s1438_s13 }
  0x1f   : > { %1547 = vmatprep.mubr.msk.f32.mxu1 %vm1750_vm1, %v1751_v2  ;;  %s942_s28 = sadd.s32 %s941_s27, %s1855_s15  ;;  %s1052_s7 = sadd.s32 %s1051_s6, %s1855_s15 }
  0x20   : > { %s1161_s12 = smul.u32 7, %s1880_s22 }
  0x21   : > { %1631 = vmatpush3.bf16.msra.mxu0 %v1628_v21  ;;  %1643 = vmatpush3.bf16.msra.mxu1 %v1820_v16 }
  0x22   : > { %1644 = vmatprep.subr.bf16.mxu0 %v1749_v1  ;;  %1650 = vmatprep.subr.bf16.mxu1 %v1749_v1  ;;  %s1162_s13 = sadd.s32 %s1161_s12, %s1855_s15 }
  0x24   : > { %1526 = vmatmul.mubr.msk.f32.vlgmr.msra.gmra.mrb[0].mxu0 %vm290_vm0, %v274_v22 }
  0x25   : > { %1646 = vmatpush3.bf16.msra.mxu0 %v1817_v10  ;;  %1558 = vmatprep.mubr.msk.f32.mxu0 %vm1750_vm1, %v1751_v2 }
  0x26   : > { %1647 = vmatprep.subr.bf16.mxu0 %v1749_v1 }
  0x29   : > { %1649 = vmatpush3.bf16.msra.mxu0 %v1820_v16 }
  0x2a   : > { %1656 = vmatprep.subr.bf16.mxu0 %v1749_v1 }
  0x89   : > { %v1844_v23 = vpop.permute.xlu0 %472 }
  0xef   : > { %v461_v24 = vpop.f32.mrb[0].mxu1 }
  0xf0   : > { %v475_v25 = vadd.f32 %v1844_v23, %v461_v24  ;;  %v1538_v26 = vpop.f32.mrb[1].mxu1 }
  0xf2   : > { %477 = vrot.lane.b32.xlu0 %v475_v25, %s1752_s9 }
  0xf7   : > { %v1527_v28 = vpop.f32.mrb[0].mxu0 }
  0xf8   : > { %v369_v29 = vadd.f32 %v1527_v28, %v1425_v27  ;;  %v363_v30 = vpop.f32.mrb[1].mxu0 }
  0xf9   : > { %v364_v31 = vadd.f32 %v1425_v27, %v363_v30 }
  0xfa   : > { %374 = vst.msk [vmem:[#allocation2 + $0x8] sm:$0xff] %vm372_vm2, %v369_v29 }
  0xfb   : > { %373 = vst.msk [vmem:[#allocation2] sm:$0xff] %vm372_vm2, %v364_v31 }
 0x102   : > { %v390_v32 = vld [vmem:[%s389_s17] sm:$0x3]  ;;  %s1441_s17 = sshll.u32 %s1880_s22, 2 }
 0x103   : > { %v465_v33 = vadd.f32 %v461_v24, %v390_v32  ;;  %v505_v52 = vld [vmem:[%s504_s29] sm:$0x3]  ;;  %s832_s21 = sadd.s32 %s1441_s17, %s1855_s15  ;;  %s1445_s29 = sshll.u32 %s942_s28, 1 }
 0x104   : > { %v615_v11 = vld [vmem:[%s614_s8] sm:$0x3]  ;;  %s1442_s23 = sshll.u32 %s832_s21, 1  ;;  %s1049_s30 = scalar_lea.vmem %s1865_s25, %s1445_s29 }
 0x105   : > { %v1430_v34 = vmul.f32 -1.442695, %v465_v33  ;;  %v725_v33 = vld [vmem:[%s724_s14] sm:$0x3]  ;;  %s834_s24 = scalar_lea.vmem [#allocation2], %s1442_s23  ;;  %s1448_s8 = sshll.u32 %s1052_s7, 1 }
 0x106   : > { %s1159_s11 = scalar_lea.vmem %s1865_s25, %s1448_s8  ;;  %s1451_s14 = sshll.u32 %s1162_s13, 1 }
 0x107   : > { %1693 = vpow2.f32 %v1430_v34  ;;  %s1269_s15 = scalar_lea.vmem %s1865_s25, %s1451_s14 }
 0x111   : > { %v1694_v35 = vpop.eup %1693 }
 0x112   : > { %v469_v36 = vadd.f32 1.0, %v1694_v35 }
 0x114   : > { %1695 = vrcp.f32 %v469_v36 }
 0x11e   : > { %v1696_v37 = vpop.eup %1695 }
 0x11f   : > { %v487_v43 = vsub.f32 1.0, %v1696_v37  ;;  %v493_v45 = vmul.f32 0.0, %v1696_v37 }
 0x164   : > { %v478_v38 = vpop.permute.xlu0 %477 }
 0x165   : > { %v480_v39 = vmul.f32 %v1696_v37, %v478_v38 }
 0x167   : > { %482 = vrot.lane.b32.xlu1 %v480_v39, %s1752_s9 }
 0x1d9   : > { %v483_v40 = vpop.permute.xlu1 %482 }
 0x1da   : > { %v485_v41 = vadd.f32 %v483_v40, %v390_v32 }
 0x1dc   : > { %1697 = vtanh.f32 %v485_v41 }
 0x1e6   : > { %v1698_v42 = vpop.eup %1697 }
 0x1e7   : > { %489 = vrot.lane.b32.xlu1 %v1698_v42, %s1753_s20 }
 0x259   : > { %v490_v44 = vpop.permute.xlu1 %489 }
 0x25a   : > { %v492_v46 = vmul.f32 %v490_v44, %v487_v43 }
 0x25c   : > { %v494_v47 = vadd.f32 %v493_v45, %v492_v46 }
 0x25e   : > { %496 = vrot.lane.b32.xlu0 %v494_v47, %s1753_s20 }
 0x2d0   : > { %v497_v48 = vpop.permute.xlu0 %496 }
 0x2d1   : > { %501 = vst.msk [vmem:[%s499_s26] sm:$0x3] %vm500_vm3, %v497_v48  ;;  %1548 = vmatmul.mubr.msk.f32.vlgmr.msra.gmra.mrb[2].mxu1 %vm391_vm4, %v497_v48  ;;  %s939_s26 = scalar_lea.vmem %s1865_s25, %s1442_s23 }
 0x2d2   : > { %1652 = vmatpush3.bf16.msra.mxu1 %v1817_v10  ;;  %1569 = vmatprep.mubr.msk.f32.mxu1 %vm1750_vm1, %v1751_v2 }
 0x2d3   : > { %1653 = vmatprep.subr.bf16.mxu1 %v1749_v1 }
 0x2d6   : > { %1655 = vmatpush3.bf16.msra.mxu1 %v1820_v16 }
 0x2d7   : > { %1662 = vmatprep.subr.bf16.mxu1 %v1749_v1 }
 0x3a4   : > { %v574_v49 = vpop.f32.mrb[2].mxu1 }
 0x3a5   : > { %v585_v50 = vadd.f32 %v574_v49, %v1844_v23  ;;  %v1549_v51 = vpop.f32.mrb[3].mxu1  ;;  %v578_v53 = vadd.f32 %v574_v49, %v505_v52 }
 0x3a7   : > { %587 = vrot.lane.b32.xlu1 %v585_v50, %s1752_s9  ;;  %v1433_v54 = vmul.f32 -1.442695, %v578_v53  ;;  %v835_v53 = vld [vmem:[%s834_s24] sm:$0x3] }
 0x3a9   : > { %1699 = vpow2.f32 %v1433_v54 }
 0x3b3   : > { %v1700_v55 = vpop.eup %1699 }
 0x3b4   : > { %v582_v56 = vadd.f32 1.0, %v1700_v55 }
 0x3b6   : > { %1701 = vrcp.f32 %v582_v56 }
 0x3c0   : > { %v1702_v57 = vpop.eup %1701 }
 0x3c1   : > { %v597_v63 = vsub.f32 1.0, %v1702_v57  ;;  %v603_v3 = vmul.f32 %v1702_v57, %v494_v47 }
 0x419   : > { %v588_v58 = vpop.permute.xlu1 %587 }
 0x41a   : > { %v590_v59 = vmul.f32 %v1702_v57, %v588_v58 }
 0x41c   : > { %592 = vrot.lane.b32.xlu0 %v590_v59, %s1752_s9 }
 0x48e   : > { %v593_v60 = vpop.permute.xlu0 %592 }
 0x48f   : > { %v595_v61 = vadd.f32 %v593_v60, %v505_v52 }
 0x491   : > { %1703 = vtanh.f32 %v595_v61 }
 0x49b   : > { %v1704_v62 = vpop.eup %1703 }
 0x49c   : > { %599 = vrot.lane.b32.xlu1 %v1704_v62, %s1753_s20 }
 0x50e   : > { %v600_v0 = vpop.permute.xlu1 %599 }
 0x50f   : > { %v602_v4 = vmul.f32 %v600_v0, %v597_v63 }
 0x511   : > { %v604_v5 = vadd.f32 %v603_v3, %v602_v4 }
 0x513   : > { %606 = vrot.lane.b32.xlu0 %v604_v5, %s1753_s20 }
 0x585   : > { %v607_v6 = vpop.permute.xlu0 %606 }
 0x586   : > { %610 = vst.msk [vmem:[%s609_s19] sm:$0x3] %vm500_vm3, %v607_v6  ;;  %1559 = vmatmul.mubr.msk.f32.vlgmr.msra.gmra.mrb[2].mxu0 %vm391_vm4, %v607_v6  ;;  %s944_s19 = scalar_lea.vmem [#allocation2], %s1445_s29 }
 0x587   : > { %1658 = vmatpush3.bf16.msra.mxu0 %v1817_v10  ;;  %1580 = vmatprep.mubr.msk.f32.mxu0 %vm1750_vm1, %v1751_v2 }
 0x588   : > { %1659 = vmatprep.subr.bf16.mxu0 %v1749_v1 }
 0x58b   : > { %1661 = vmatpush3.bf16.msra.mxu0 %v1820_v16 }
 0x58c   : > { %1668 = vmatprep.subr.bf16.mxu0 %v1749_v1 }
 0x659   : > { %v684_v7 = vpop.f32.mrb[2].mxu0 }
 0x65a   : > { %v695_v8 = vadd.f32 %v684_v7, %v1844_v23  ;;  %v1560_v9 = vpop.f32.mrb[3].mxu0  ;;  %v688_v12 = vadd.f32 %v684_v7, %v615_v11 }
 0x65c   : > { %697 = vrot.lane.b32.xlu1 %v695_v8, %s1752_s9  ;;  %v1437_v13 = vmul.f32 -1.442695, %v688_v12  ;;  %v945_v12 = vld [vmem:[%s944_s19] sm:$0x3] }
 0x65e   : > { %1705 = vpow2.f32 %v1437_v13 }
 0x668   : > { %v1706_v14 = vpop.eup %1705 }
 0x669   : > { %v692_v15 = vadd.f32 1.0, %v1706_v14 }
 0x66b   : > { %1707 = vrcp.f32 %v692_v15 }
 0x675   : > { %v1708_v17 = vpop.eup %1707 }
 0x676   : > { %v707_v24 = vsub.f32 1.0, %v1708_v17  ;;  %v713_v26 = vmul.f32 %v1708_v17, %v604_v5 }
 0x6ce   : > { %v698_v18 = vpop.permute.xlu1 %697 }
 0x6cf   : > { %v700_v19 = vmul.f32 %v1708_v17, %v698_v18 }
 0x6d1   : > { %702 = vrot.lane.b32.xlu0 %v700_v19, %s1752_s9 }
 0x743   : > { %v703_v20 = vpop.permute.xlu0 %702 }
 0x744   : > { %v705_v21 = vadd.f32 %v703_v20, %v615_v11 }
 0x746   : > { %1709 = vtanh.f32 %v705_v21 }
 0x750   : > { %v1710_v22 = vpop.eup %1709 }
 0x751   : > { %709 = vrot.lane.b32.xlu1 %v1710_v22, %s1753_s20 }
 0x7c3   : > { %v710_v25 = vpop.permute.xlu1 %709 }
 0x7c4   : > { %v712_v27 = vmul.f32 %v710_v25, %v707_v24 }
 0x7c6   : > { %v714_v28 = vadd.f32 %v713_v26, %v712_v27 }
 0x7c8   : > { %716 = vrot.lane.b32.xlu0 %v714_v28, %s1753_s20 }
 0x83a   : > { %v717_v29 = vpop.permute.xlu0 %716 }
 0x83b   : > { %720 = vst.msk [vmem:[%s719_s10] sm:$0x3] %vm500_vm3, %v717_v29  ;;  %1570 = vmatmul.mubr.msk.f32.vlgmr.msra.gmra.mrb[4].mxu1 %vm391_vm4, %v717_v29  ;;  %s1054_s10 = scalar_lea.vmem [#allocation2], %s1448_s8 }
 0x83c   : > { %1664 = vmatpush3.bf16.msra.mxu1 %v1817_v10  ;;  %1591 = vmatprep.mubr.msk.f32.mxu1 %vm1750_vm1, %v1751_v2 }
 0x83d   : > { %1665 = vmatprep.subr.bf16.mxu1 %v1749_v1 }
 0x840   : > { %1667 = vmatpush3.bf16.msra.mxu1 %v1820_v16 }
 0x841   : > { %1674 = vmatprep.subr.bf16.mxu1 %v1749_v1 }
 0x90e   : > { %v794_v30 = vpop.f32.mrb[4].mxu1 }
 0x90f   : > { %v805_v31 = vadd.f32 %v794_v30, %v1844_v23  ;;  %v1571_v32 = vpop.f32.mrb[5].mxu1  ;;  %v798_v34 = vadd.f32 %v794_v30, %v725_v33  ;;  %v1055_v30 = vld [vmem:[%s1054_s10] sm:$0x3] }
 0x911   : > { %807 = vrot.lane.b32.xlu1 %v805_v31, %s1752_s9  ;;  %v1440_v35 = vmul.f32 -1.442695, %v798_v34 }
 0x913   : > { %1711 = vpow2.f32 %v1440_v35 }
 0x91d   : > { %v1712_v36 = vpop.eup %1711 }
 0x91e   : > { %v802_v37 = vadd.f32 1.0, %v1712_v36 }
 0x920   : > { %1713 = vrcp.f32 %v802_v37 }
 0x92a   : > { %v1714_v38 = vpop.eup %1713 }
 0x92b   : > { %v817_v44 = vsub.f32 1.0, %v1714_v38  ;;  %v823_v46 = vmul.f32 %v1714_v38, %v714_v28 }
 0x983   : > { %v808_v39 = vpop.permute.xlu1 %807 }
 0x984   : > { %v810_v40 = vmul.f32 %v1714_v38, %v808_v39 }
 0x986   : > { %812 = vrot.lane.b32.xlu0 %v810_v40, %s1752_s9 }
 0x9f8   : > { %v813_v41 = vpop.permute.xlu0 %812 }
 0x9f9   : > { %v815_v42 = vadd.f32 %v813_v41, %v725_v33 }
 0x9fb   : > { %1715 = vtanh.f32 %v815_v42 }
 0xa05   : > { %v1716_v43 = vpop.eup %1715 }
 0xa06   : > { %819 = vrot.lane.b32.xlu1 %v1716_v43, %s1753_s20 }
 0xa78   : > { %v820_v45 = vpop.permute.xlu1 %819 }
 0xa79   : > { %v822_v47 = vmul.f32 %v820_v45, %v817_v44 }
 0xa7b   : > { %v824_v48 = vadd.f32 %v823_v46, %v822_v47 }
 0xa7d   : > { %826 = vrot.lane.b32.xlu0 %v824_v48, %s1753_s20 }
 0xaef   : > { %v827_v49 = vpop.permute.xlu0 %826 }
 0xaf0   : > { %830 = vst.msk [vmem:[%s829_s16] sm:$0x3] %vm500_vm3, %v827_v49  ;;  %1581 = vmatmul.mubr.msk.f32.vlgmr.msra.gmra.mrb[4].mxu0 %vm391_vm4, %v827_v49  ;;  %s1164_s16 = scalar_lea.vmem [#allocation2], %s1451_s14 }
 0xaf1   : > { %1670 = vmatpush3.bf16.msra.mxu0 %v1817_v10  ;;  %1602 = vmatprep.mubr.msk.f32.mxu0 %vm1750_vm1, %v1751_v2 }
 0xaf2   : > { %1671 = vmatprep.subr.bf16.mxu0 %v1749_v1 }
 0xaf5   : > { %1673 = vmatpush3.bf16.msra.mxu0 %v1820_v16 }
 0xbc3   : > { %v904_v50 = vpop.f32.mrb[4].mxu0 }
 0xbc4   : > { %v915_v51 = vadd.f32 %v904_v50, %v1844_v23  ;;  %v1582_v52 = vpop.f32.mrb[5].mxu0  ;;  %v908_v54 = vadd.f32 %v904_v50, %v835_v53  ;;  %v1165_v50 = vld [vmem:[%s1164_s16] sm:$0x3] }
 0xbc6   : > { %917 = vrot.lane.b32.xlu1 %v915_v51, %s1752_s9  ;;  %v1444_v55 = vmul.f32 -1.442695, %v908_v54 }
 0xbc8   : > { %1717 = vpow2.f32 %v1444_v55 }
 0xbd2   : > { %v1718_v56 = vpop.eup %1717 }
 0xbd3   : > { %v912_v57 = vadd.f32 1.0, %v1718_v56 }
 0xbd5   : > { %1719 = vrcp.f32 %v912_v57 }
 0xbdf   : > { %v1720_v58 = vpop.eup %1719 }
 0xbe0   : > { %v927_v0 = vsub.f32 1.0, %v1720_v58  ;;  %v933_v4 = vmul.f32 %v1720_v58, %v824_v48 }
 0xc38   : > { %v918_v59 = vpop.permute.xlu1 %917 }
 0xc39   : > { %v920_v60 = vmul.f32 %v1720_v58, %v918_v59 }
 0xc3b   : > { %922 = vrot.lane.b32.xlu0 %v920_v60, %s1752_s9 }
 0xcad   : > { %v923_v61 = vpop.permute.xlu0 %922 }
 0xcae   : > { %v925_v62 = vadd.f32 %v923_v61, %v835_v53 }
 0xcb0   : > { %1721 = vtanh.f32 %v925_v62 }
 0xcba   : > { %v1722_v63 = vpop.eup %1721 }
 0xcbb   : > { %929 = vrot.lane.b32.xlu1 %v1722_v63, %s1753_s20 }
 0xd2d   : > { %v930_v3 = vpop.permute.xlu1 %929 }
 0xd2e   : > { %v932_v5 = vmul.f32 %v930_v3, %v927_v0 }
 0xd30   : > { %v934_v6 = vadd.f32 %v933_v4, %v932_v5 }
 0xd32   : > { %936 = vrot.lane.b32.xlu0 %v934_v6, %s1753_s20 }
 0xda4   : > { %v937_v7 = vpop.permute.xlu0 %936 }
 0xda5   : > { %940 = vst.msk [vmem:[%s939_s26] sm:$0x3] %vm500_vm3, %v937_v7  ;;  %1592 = vmatmul.mubr.msk.f32.vlgmr.msra.gmra.mrb[6].mxu1 %vm391_vm4, %v937_v7 }
 0xda6   : > { %1676 = vmatpush3.bf16.msra.mxu1 %v1817_v10  ;;  %1613 = vmatprep.mubr.msk.f32.mxu1 %vm1750_vm1, %v1751_v2 }
 0xda7   : > { %1677 = vmatprep.subr.bf16.mxu1 %v1749_v1 }
 0xdaa   : > { %1679 = vmatpush3.bf16.msra.mxu1 %v1820_v16 }
 0xe78   : > { %v1014_v8 = vpop.f32.mrb[6].mxu1 }
 0xe79   : > { %v1025_v9 = vadd.f32 %v1014_v8, %v1844_v23  ;;  %v1593_v11 = vpop.f32.mrb[7].mxu1  ;;  %v1018_v13 = vadd.f32 %v1014_v8, %v945_v12 }
 0xe7b   : > { %1027 = vrot.lane.b32.xlu1 %v1025_v9, %s1752_s9  ;;  %v1447_v10 = vmul.f32 -1.442695, %v1018_v13 }
 0xe7d   : > { %1723 = vpow2.f32 %v1447_v10 }
 0xe87   : > { %v1724_v14 = vpop.eup %1723 }
 0xe88   : > { %v1022_v2 = vadd.f32 1.0, %v1724_v14 }
 0xe8a   : > { %1725 = vrcp.f32 %v1022_v2 }
 0xe94   : > { %v1726_v1 = vpop.eup %1725 }
 0xe95   : > { %v1037_v20 = vsub.f32 1.0, %v1726_v1  ;;  %v1043_v22 = vmul.f32 %v1726_v1, %v934_v6 }
 0xeed   : > { %v1028_v16 = vpop.permute.xlu1 %1027 }
 0xeee   : > { %v1030_v15 = vmul.f32 %v1726_v1, %v1028_v16 }
 0xef0   : > { %1032 = vrot.lane.b32.xlu0 %v1030_v15, %s1752_s9 }
 0xf62   : > { %v1033_v17 = vpop.permute.xlu0 %1032 }
 0xf63   : > { %v1035_v18 = vadd.f32 %v1033_v17, %v945_v12 }
 0xf65   : > { %1727 = vtanh.f32 %v1035_v18 }
 0xf6f   : > { %v1728_v19 = vpop.eup %1727 }
 0xf70   : > { %1039 = vrot.lane.b32.xlu1 %v1728_v19, %s1753_s20 }
 0xfe2   : > { %v1040_v21 = vpop.permute.xlu1 %1039 }
 0xfe3   : > { %v1042_v24 = vmul.f32 %v1040_v21, %v1037_v20 }
 0xfe5   : > { %v1044_v25 = vadd.f32 %v1043_v22, %v1042_v24 }
 0xfe7   : > { %1046 = vrot.lane.b32.xlu0 %v1044_v25, %s1753_s20 }
0x1059   : > { %v1047_v26 = vpop.permute.xlu0 %1046 }
0x105a   : > { %1050 = vst.msk [vmem:[%s1049_s30] sm:$0x3] %vm500_vm3, %v1047_v26  ;;  %1603 = vmatmul.mubr.msk.f32.vlgmr.msra.gmra.mrb[6].mxu0 %vm391_vm4, %v1047_v26 }
0x112d   : > { %v1124_v27 = vpop.f32.mrb[6].mxu0 }
0x112e   : > { %v1135_v28 = vadd.f32 %v1124_v27, %v1844_v23  ;;  %v1604_v29 = vpop.f32.mrb[7].mxu0  ;;  %v1128_v31 = vadd.f32 %v1124_v27, %v1055_v30 }
0x1130   : > { %1137 = vrot.lane.b32.xlu1 %v1135_v28, %s1752_s9  ;;  %v1450_v32 = vmul.f32 -1.442695, %v1128_v31 }
0x1132   : > { %1729 = vpow2.f32 %v1450_v32 }
0x113c   : > { %v1730_v33 = vpop.eup %1729 }
0x113d   : > { %v1132_v34 = vadd.f32 1.0, %v1730_v33 }
0x113f   : > { %1731 = vrcp.f32 %v1132_v34 }
0x1149   : > { %v1732_v35 = vpop.eup %1731 }
0x114a   : > { %v1147_v41 = vsub.f32 1.0, %v1732_v35  ;;  %v1153_v43 = vmul.f32 %v1732_v35, %v1044_v25 }
0x11a2   : > { %v1138_v36 = vpop.permute.xlu1 %1137 }
0x11a3   : > { %v1140_v37 = vmul.f32 %v1732_v35, %v1138_v36 }
0x11a5   : > { %1142 = vrot.lane.b32.xlu0 %v1140_v37, %s1752_s9 }
0x1217   : > { %v1143_v38 = vpop.permute.xlu0 %1142 }
0x1218   : > { %v1145_v39 = vadd.f32 %v1143_v38, %v1055_v30 }
0x121a   : > { %1733 = vtanh.f32 %v1145_v39 }
0x1224   : > { %v1734_v40 = vpop.eup %1733 }
0x1225   : > { %1149 = vrot.lane.b32.xlu1 %v1734_v40, %s1753_s20 }
0x1297   : > { %v1150_v42 = vpop.permute.xlu1 %1149 }
0x1298   : > { %v1152_v44 = vmul.f32 %v1150_v42, %v1147_v41 }
0x129a   : > { %v1154_v45 = vadd.f32 %v1153_v43, %v1152_v44 }
0x129c   : > { %1156 = vrot.lane.b32.xlu0 %v1154_v45, %s1753_s20 }
0x130e   : > { %v1157_v46 = vpop.permute.xlu0 %1156 }
0x130f   : > { %1160 = vst.msk [vmem:[%s1159_s11] sm:$0x3] %vm500_vm3, %v1157_v46  ;;  %1614 = vmatmul.mubr.msk.f32.vlgmr.msra.gmra.mrb[8].mxu1 %vm391_vm4, %v1157_v46 }
0x13e2   : > { %v1234_v47 = vpop.f32.mrb[8].mxu1 }
0x13e3   : > { %v1245_v48 = vadd.f32 %v1234_v47, %v1844_v23  ;;  %v1615_v49 = vpop.f32.mrb[9].mxu1  ;;  %v1238_v51 = vadd.f32 %v1234_v47, %v1165_v50 }
0x13e5   : > { %1247 = vrot.lane.b32.xlu1 %v1245_v48, %s1752_s9  ;;  %v1453_v52 = vmul.f32 -1.442695, %v1238_v51 }
0x13e7   : > { %1735 = vpow2.f32 %v1453_v52 }
0x13f1   : > { %v1736_v53 = vpop.eup %1735 }
0x13f2   : > { %v1242_v54 = vadd.f32 1.0, %v1736_v53 }
0x13f4   : > { %1737 = vrcp.f32 %v1242_v54 }
0x13fe   : > { %v1738_v55 = vpop.eup %1737 }
0x13ff   : > { %v1257_v60 = vsub.f32 1.0, %v1738_v55  ;;  %v1263_v62 = vmul.f32 %v1738_v55, %v1154_v45 }
0x1457   : > { %v1248_v56 = vpop.permute.xlu1 %1247 }
0x1458   : > { %v1250_v57 = vmul.f32 %v1738_v55, %v1248_v56 }
0x145a   : > { %1252 = vrot.lane.b32.xlu0 %v1250_v57, %s1752_s9 }
0x14cc   : > { %v1253_v23 = vpop.permute.xlu0 %1252 }
0x14cd   : > { %v1255_v58 = vadd.f32 %v1253_v23, %v1165_v50 }
0x14cf   : > { %1739 = vtanh.f32 %v1255_v58 }
0x14d9   : > { %v1740_v59 = vpop.eup %1739 }
0x14da   : > { %1259 = vrot.lane.b32.xlu1 %v1740_v59, %s1753_s20 }
0x154c   : > { %v1260_v61 = vpop.permute.xlu1 %1259 }
0x154d   : > { %v1262_v63 = vmul.f32 %v1260_v61, %v1257_v60 }
0x154f   : > { %v1264_v0 = vadd.f32 %v1263_v62, %v1262_v63 }
0x1551   : > { %1266 = vrot.lane.b32.xlu0 %v1264_v0, %s1753_s20 }
0x15c3   : > { %v1267_v3 = vpop.permute.xlu0 %1266 }
0x15c4   : > { %1270 = vst.msk [vmem:[%s1269_s15] sm:$0x3] %vm500_vm3, %v1267_v3 }
0x15c5 PF: > { %s15_s18 = sadd.s32 1, %s1747_s18  }
0x15c6   : > { %p12_p5 = scmp.ge.s32.totalorder %s15_s18, 4  }
0x15c8   :  { %14 = sbr.rel (!%p12_p5) target bundleno = 1 (0x1), region = 95 }

</bundles_post_ra>
